<compile_context>
chip_gen: v5e
topology: v5e:2x2
jax: 0.10.0
libtpu: 0.0.40
codegen_flags: <defaults>
</compile_context>

<pallas_src>
import functools

import jax
import jax.numpy as jnp
from jax.experimental import pallas as pl
from jax.experimental.pallas import tpu as pltpu

LANE = 128
_VMEM_LIMIT = 48 * 1024 * 1024  # explicit scoped-VMEM limit (safe on v7x's 64 MiB)


def _round_up(v, m):
    return (v + m - 1) // m * m


def _pad2(a, rows, cols):
    r, c = a.shape
    return jnp.pad(a, ((0, rows - r), (0, cols - c)))


# ---------------------------------------------------------------------------
# Kernels
# ---------------------------------------------------------------------------

def _pre_kernel(x_ref, s_ref, wp_ref, bp_ref, we_ref, be_ref, xo_ref, so_ref):
    """x = pre(x); s = embedding_s(s)   (fused, per node-row tile)."""
    xo_ref[...] = (jnp.dot(x_ref[...], wp_ref[...],
                           preferred_element_type=jnp.float32)
                   + bp_ref[...]).astype(xo_ref.dtype)
    so_ref[...] = (jnp.dot(s_ref[...], we_ref[...],
                           preferred_element_type=jnp.float32)
                   + be_ref[...]).astype(so_ref.dtype)


def _layer_kernel(ag_ref, ah_ref, x_ref, s_ref,
                  w1x_ref, w1s_ref, b1_ref, w2_ref, b2_ref, wg_ref, bg_ref,
                  xo_ref, so_ref, accx_ref, accs_ref):
    """One fused GIN(+outer ReLU) and GCN(+tanh) layer, tiled over nodes.

    GIN (eps=0), reassociated:
        u   = x @ W1x + s @ W1s                       (== [x|s] @ W1)
        x'  = relu( relu( (A+I) @ u + b1 ) @ W2 + b2 )
    GCN:
        s'  = tanh( A_hat @ (s @ Wg) + bg )
    Row-tile axis i is "parallel"; reduction (source-node) axis k is last.
    """
    k = pl.program_id(1)

    @pl.when(k == 0)
    def _():
        accx_ref[...] = jnp.zeros_like(accx_ref)
        accs_ref[...] = jnp.zeros_like(accs_ref)

    x_k = x_ref[...]
    s_k = s_ref[...]

    # GIN: hidden-dim projection first (halves the N^2 MXU work), then
    # bf16 adjacency matmul with f32 accumulation.
    u = (jnp.dot(x_k, w1x_ref[...], preferred_element_type=jnp.float32)
         + jnp.dot(s_k, w1s_ref[...], preferred_element_type=jnp.float32))
    accx_ref[...] += jnp.dot(ag_ref[...], u.astype(ag_ref.dtype),
                             preferred_element_type=jnp.float32)

    # GCN: same ordering (project then aggregate).
    v = jnp.dot(s_k, wg_ref[...], preferred_element_type=jnp.float32)
    accs_ref[...] += jnp.dot(ah_ref[...], v.astype(ah_ref.dtype),
                             preferred_element_type=jnp.float32)

    @pl.when(k == pl.num_programs(1) - 1)
    def _():
        h = jnp.maximum(accx_ref[...] + b1_ref[...], 0.0)
        y = jnp.dot(h, w2_ref[...], preferred_element_type=jnp.float32) + b2_ref[...]
        xo_ref[...] = jnp.maximum(y, 0.0).astype(xo_ref.dtype)
        so_ref[...] = jnp.tanh(accs_ref[...] + bg_ref[...]).astype(so_ref.dtype)


def _tail_kernel(p_ref, x_ref, s_ref,
                 whx_ref, whs_ref, bwh_ref,
                 wpost_ref, bpost_ref, wro_ref, bro_ref,
                 o_ref, acc_ref, *, nclass):
    """Whp -> global_add_pool -> post(ReLU) -> readout -> log_softmax (fused)."""
    k = pl.program_id(0)

    @pl.when(k == 0)
    def _():
        acc_ref[...] = jnp.zeros_like(acc_ref)

    xw = (jnp.dot(x_ref[...], whx_ref[...], preferred_element_type=jnp.float32)
          + jnp.dot(s_ref[...], whs_ref[...], preferred_element_type=jnp.float32)
          + bwh_ref[...])
    acc_ref[...] += jnp.dot(p_ref[...], xw.astype(p_ref.dtype),
                            preferred_element_type=jnp.float32)

    @pl.when(k == pl.num_programs(0) - 1)
    def _():
        pooled = acc_ref[...]
        h = jnp.maximum(
            jnp.dot(pooled, wpost_ref[...], preferred_element_type=jnp.float32)
            + bpost_ref[...], 0.0)
        logits = (jnp.dot(h, wro_ref[...], preferred_element_type=jnp.float32)
                  + bro_ref[...])
        # Mask the padded class columns before the softmax.
        col = jax.lax.broadcasted_iota(jnp.int32, logits.shape, 1)
        logits = jnp.where(col < nclass, logits, -1e30)
        m = jnp.max(logits, axis=-1, keepdims=True)
        z = logits - m
        lse = jnp.log(jnp.sum(jnp.exp(z), axis=-1, keepdims=True))
        o_ref[...] = (z - lse).astype(o_ref.dtype)


# ---------------------------------------------------------------------------
# Parameters (torch-style uniform init, stored padded & pre-split).
# ---------------------------------------------------------------------------

def _linear_params(key, fan_in, fan_out):
    kw, kb = jax.random.split(key)
    scale = 1.0 / jnp.sqrt(jnp.float32(fan_in))
    w = jax.random.uniform(kw, (fan_in, fan_out), jnp.float32, -scale, scale)
    b = jax.random.uniform(kb, (1, fan_out), jnp.float32, -scale, scale)
    return w, b


def init_gin_dc_params(key, nfeat, n_se, nhid, nclass, nlayer):
    H = _round_up(nhid, LANE)
    Fx = _round_up(nfeat, LANE)
    Fs = _round_up(n_se, LANE)
    C = _round_up(nclass, LANE)

    keys = jax.random.split(key, 6 + 3 * nlayer)
    p = {}
    w, b = _linear_params(keys[0], nfeat, nhid)
    p["pre_w"], p["pre_b"] = _pad2(w, Fx, H), _pad2(b, 1, H)
    w, b = _linear_params(keys[1], n_se, nhid)
    p["emb_w"], p["emb_b"] = _pad2(w, Fs, H), _pad2(b, 1, H)

    p["layers"] = []
    for l in range(nlayer):
        k1, k2, k3 = keys[2 + 3 * l], keys[3 + 3 * l], keys[4 + 3 * l]
        w1, b1 = _linear_params(k1, nhid + nhid, nhid)
        w2, b2 = _linear_params(k2, nhid, nhid)
        wg, bg = _linear_params(k3, nhid, nhid)
        p["layers"].append({
            "gin_w1x": _pad2(w1[:nhid], H, H),     # split of W1: x half
            "gin_w1s": _pad2(w1[nhid:], H, H),     # split of W1: s half
            "gin_b1": _pad2(b1, 1, H),
            "gin_w2": _pad2(w2, H, H), "gin_b2": _pad2(b2, 1, H),
            "gcn_w": _pad2(wg, H, H), "gcn_b": _pad2(bg, 1, H),
        })

    w, b = _linear_params(keys[-4], nhid + nhid, nhid)
    p["whp_wx"], p["whp_ws"] = _pad2(w[:nhid], H, H), _pad2(w[nhid:], H, H)
    p["whp_b"] = _pad2(b, 1, H)
    w, b = _linear_params(keys[-3], nhid, nhid)
    p["post_w"], p["post_b"] = _pad2(w, H, H), _pad2(b, 1, H)
    w, b = _linear_params(keys[-2], nhid, nclass)
    p["ro_w"], p["ro_b"] = _pad2(w, H, C), _pad2(b, 1, C)
    return p


# ---------------------------------------------------------------------------
# Glue: dense graph operators at padded sizes (plain JAX; scatter has no clean
# Pallas equivalent).  A_gin = A + I folds the GIN self term (eps = 0).
# ---------------------------------------------------------------------------

def build_graph_operators(edge_index, batch, num_nodes, num_graphs, n_pad, g_pad):
    src, dst = edge_index[0], edge_index[1]
    A = jnp.zeros((n_pad, n_pad), jnp.float32).at[dst, src].add(1.0)
    eye = jnp.eye(n_pad, dtype=jnp.float32)
    A_gin = A + eye                                  # (1+eps)*x_i + sum_j x_j
    A_sl = A + eye                                   # GCN self loops
    deg = jnp.sum(A_sl, axis=1)
    dinv = 1.0 / jnp.sqrt(jnp.maximum(deg, 1e-12))
    A_hat = dinv[:, None] * A_sl * dinv[None, :]
    P = jnp.zeros((g_pad, n_pad), jnp.float32).at[
        batch, jnp.arange(num_nodes)].set(1.0)
    # bf16 operators: A_gin / P exact (small integers, 0/1); A_hat ~3 mantissa
    # bits of degree-scaling error.  f32 accumulation is kept in-kernel.
    return (A_gin.astype(jnp.bfloat16), A_hat.astype(jnp.bfloat16),
            P.astype(jnp.bfloat16))


# ---------------------------------------------------------------------------
# Forward pass (eval mode: dropout == identity).
# ---------------------------------------------------------------------------

def gin_dc_forward(p, x, s, A_gin, A_hat, P, *, nclass, tile_n):
    n_pad = x.shape[0]
    g_pad = P.shape[0]
    H = p["pre_w"].shape[1]
    C_pad = p["ro_w"].shape[1]
    Fx = p["pre_w"].shape[0]
    Fs = p["emb_w"].shape[0]
    ni = n_pad // tile_n
    nk = ni

    cparams_par = pltpu.CompilerParams(
        dimension_semantics=("parallel",), vmem_limit_bytes=_VMEM_LIMIT)
    cparams_layer = pltpu.CompilerParams(
        dimension_semantics=("parallel", "arbitrary"),
        vmem_limit_bytes=_VMEM_LIMIT)
    cparams_tail = pltpu.CompilerParams(
        dimension_semantics=("arbitrary",), vmem_limit_bytes=_VMEM_LIMIT)

    # ---- pre(x) + embedding_s(s), fused, tiled over node rows -------------
    x0, s0 = pl.pallas_call(
        _pre_kernel,
        out_shape=(jax.ShapeDtypeStruct((n_pad, H), jnp.float32),
                   jax.ShapeDtypeStruct((n_pad, H), jnp.float32)),
        grid_spec=pltpu.PrefetchScalarGridSpec(
            num_scalar_prefetch=0, grid=(ni,),
            in_specs=[pl.BlockSpec((tile_n, Fx), lambda i: (i, 0)),
                      pl.BlockSpec((tile_n, Fs), lambda i: (i, 0)),
                      pl.BlockSpec((Fx, H), lambda i: (0, 0)),
                      pl.BlockSpec((1, H), lambda i: (0, 0)),
                      pl.BlockSpec((Fs, H), lambda i: (0, 0)),
                      pl.BlockSpec((1, H), lambda i: (0, 0))],
            out_specs=(pl.BlockSpec((tile_n, H), lambda i: (i, 0)),
                       pl.BlockSpec((tile_n, H), lambda i: (i, 0)))),
        compiler_params=cparams_par,
    )(x, s, p["pre_w"], p["pre_b"], p["emb_w"], p["emb_b"])

    # ---- per-layer fused GIN + GCN -----------------------------------------
    for lp in p["layers"]:
        x0, s0 = pl.pallas_call(
            _layer_kernel,
            out_shape=(jax.ShapeDtypeStruct((n_pad, H), jnp.float32),
                       jax.ShapeDtypeStruct((n_pad, H), jnp.float32)),
            grid_spec=pltpu.PrefetchScalarGridSpec(
                num_scalar_prefetch=0, grid=(ni, nk),
                in_specs=[
                    pl.BlockSpec((tile_n, tile_n), lambda i, k: (i, k)),  # A+I
                    pl.BlockSpec((tile_n, tile_n), lambda i, k: (i, k)),  # A_hat
                    pl.BlockSpec((tile_n, H), lambda i, k: (k, 0)),       # x (src)
                    pl.BlockSpec((tile_n, H), lambda i, k: (k, 0)),       # s (src)
                    pl.BlockSpec((H, H), lambda i, k: (0, 0)),            # W1x
                    pl.BlockSpec((H, H), lambda i, k: (0, 0)),            # W1s
                    pl.BlockSpec((1, H), lambda i, k: (0, 0)),            # b1
                    pl.BlockSpec((H, H), lambda i, k: (0, 0)),            # W2
                    pl.BlockSpec((1, H), lambda i, k: (0, 0)),            # b2
                    pl.BlockSpec((H, H), lambda i, k: (0, 0)),            # Wg
                    pl.BlockSpec((1, H), lambda i, k: (0, 0)),            # bg
                ],
                out_specs=(pl.BlockSpec((tile_n, H), lambda i, k: (i, 0)),
                           pl.BlockSpec((tile_n, H), lambda i, k: (i, 0))),
                scratch_shapes=[pltpu.VMEM((tile_n, H), jnp.float32),
                                pltpu.VMEM((tile_n, H), jnp.float32)]),
            compiler_params=cparams_layer,
        )(A_gin, A_hat, x0, s0,
          lp["gin_w1x"], lp["gin_w1s"], lp["gin_b1"],
          lp["gin_w2"], lp["gin_b2"], lp["gcn_w"], lp["gcn_b"])

    # ---- tail: Whp -> pool -> post -> readout -> log_softmax ---------------
    out = pl.pallas_call(
        functools.partial(_tail_kernel, nclass=nclass),
        out_shape=jax.ShapeDtypeStruct((g_pad, C_pad), jnp.float32),
        grid_spec=pltpu.PrefetchScalarGridSpec(
            num_scalar_prefetch=0, grid=(nk,),
            in_specs=[
                pl.BlockSpec((g_pad, tile_n), lambda k: (0, k)),   # P
                pl.BlockSpec((tile_n, H), lambda k: (k, 0)),       # x
                pl.BlockSpec((tile_n, H), lambda k: (k, 0)),       # s
                pl.BlockSpec((H, H), lambda k: (0, 0)),            # Whp_x
                pl.BlockSpec((H, H), lambda k: (0, 0)),            # Whp_s
                pl.BlockSpec((1, H), lambda k: (0, 0)),            # b_whp
                pl.BlockSpec((H, H), lambda k: (0, 0)),            # W_post
                pl.BlockSpec((1, H), lambda k: (0, 0)),            # b_post
                pl.BlockSpec((H, C_pad), lambda k: (0, 0)),        # W_ro
                pl.BlockSpec((1, C_pad), lambda k: (0, 0)),        # b_ro
            ],
            out_specs=pl.BlockSpec((g_pad, C_pad), lambda k: (0, 0)),
            scratch_shapes=[pltpu.VMEM((g_pad, H), jnp.float32)]),
        compiler_params=cparams_tail,
    )(P, x0, s0, p["whp_wx"], p["whp_ws"], p["whp_b"],
      p["post_w"], p["post_b"], p["ro_w"], p["ro_b"])
    return out


# ---------------------------------------------------------------------------
if __name__ == "__main__":
    # Small synthetic batched graph: 2 graphs x 6 nodes (ring graphs).
    NFEAT, N_SE, NHID, NCLASS, NLAYER = 6, 5, 32, 3, 2
    NODES_PER_GRAPH, NUM_GRAPHS = 6, 2
    N = NODES_PER_GRAPH * NUM_GRAPHS

    srcs, dsts = [], []
    for gid in range(NUM_GRAPHS):
        off = gid * NODES_PER_GRAPH
        for i in range(NODES_PER_GRAPH):
            a, b = off + i, off + (i + 1) % NODES_PER_GRAPH
            srcs += [a, b]
            dsts += [b, a]
    edge_index = jnp.array([srcs, dsts], dtype=jnp.int32)
    batch = jnp.repeat(jnp.arange(NUM_GRAPHS, dtype=jnp.int32), NODES_PER_GRAPH)

    # Tiling: 256-aligned node tiles when the graph is big enough, else 128.
    TILE_N = 256 if N > 128 else 128
    N_PAD = _round_up(N, TILE_N)
    G_PAD = _round_up(NUM_GRAPHS, 8)
    FX_PAD = _round_up(NFEAT, LANE)
    FS_PAD = _round_up(N_SE, LANE)

    key = jax.random.PRNGKey(0)
    kx, ks, kp = jax.random.split(key, 3)
    x = jax.random.normal(kx, (N, NFEAT), jnp.float32)
    stc_enc = jax.random.normal(ks, (N, N_SE), jnp.float32)

    x_pad = _pad2(x, N_PAD, FX_PAD)
    s_pad = _pad2(stc_enc, N_PAD, FS_PAD)

    params = init_gin_dc_params(kp, NFEAT, N_SE, NHID, NCLASS, NLAYER)
    A_gin, A_hat, P = build_graph_operators(
        edge_index, batch, N, NUM_GRAPHS, N_PAD, G_PAD)

    fwd = jax.jit(functools.partial(gin_dc_forward, nclass=NCLASS, tile_n=TILE_N))
    out_full = fwd(params, x_pad, s_pad, A_gin, A_hat, P)
    out = jax.block_until_ready(out_full)[:NUM_GRAPHS, :NCLASS]

    assert out.shape == (NUM_GRAPHS, NCLASS)
    # log_softmax rows should (approximately) exponentiate-sum to 1.
    assert jnp.allclose(jnp.sum(jnp.exp(out), axis=1), 1.0, atol=1e-4)
    print("KERNEL_OK")
</pallas_src>

<mosaic_0001>
module attributes {stable_mosaic.version = 11 : i64} {
  func.func @_pre_kernel(%arg0: i32, %arg1: memref<128x128xf32, #tpu.memory_space<vmem>>, %arg2: memref<128x128xf32, #tpu.memory_space<vmem>>, %arg3: memref<128x128xf32, #tpu.memory_space<vmem>>, %arg4: memref<1x128xf32, #tpu.memory_space<vmem>>, %arg5: memref<128x128xf32, #tpu.memory_space<vmem>>, %arg6: memref<1x128xf32, #tpu.memory_space<vmem>>, %arg7: memref<128x128xf32, #tpu.memory_space<vmem>>, %arg8: memref<128x128xf32, #tpu.memory_space<vmem>>) attributes {dimension_semantics = [#tpu.dimension_semantics<parallel>], iteration_bounds = array<i64: 1>, scalar_prefetch = 0 : i64, scratch_operands = 0 : i64, tpu.core_type = #tpu.core_type<tc>, window_params = [{transform_indices = @transform_0, window_bounds = array<i64: 128, 128>}, {transform_indices = @transform_1, window_bounds = array<i64: 128, 128>}, {pipeline_mode = #tpu.pipeline_mode<synchronous>, transform_indices = @transform_2, window_bounds = array<i64: 128, 128>}, {pipeline_mode = #tpu.pipeline_mode<synchronous>, transform_indices = @transform_3, window_bounds = array<i64: 1, 128>}, {pipeline_mode = #tpu.pipeline_mode<synchronous>, transform_indices = @transform_4, window_bounds = array<i64: 128, 128>}, {pipeline_mode = #tpu.pipeline_mode<synchronous>, transform_indices = @transform_5, window_bounds = array<i64: 1, 128>}, {transform_indices = @transform_6, window_bounds = array<i64: 128, 128>}, {transform_indices = @transform_7, window_bounds = array<i64: 128, 128>}]} {
    %c0 = arith.constant 0 : index
    %c0_0 = arith.constant 0 : index
    %0 = vector.load %arg1[%c0, %c0_0] : memref<128x128xf32, #tpu.memory_space<vmem>>, vector<128x128xf32>
    %c0_1 = arith.constant 0 : index
    %c0_2 = arith.constant 0 : index
    %1 = vector.load %arg3[%c0_1, %c0_2] : memref<128x128xf32, #tpu.memory_space<vmem>>, vector<128x128xf32>
    %cst = arith.constant dense<0.000000e+00> : vector<128x128xf32>
    %2 = tpu.matmul %0, %1, %cst {dimension_numbers = #tpu.dot_dimension_numbers<[1], [0], [0], [1], [0, 0, 1, 1], [], []>} : vector<128x128xf32>, vector<128x128xf32>, vector<128x128xf32> -> vector<128x128xf32>
    %c0_3 = arith.constant 0 : index
    %c0_4 = arith.constant 0 : index
    %3 = vector.load %arg4[%c0_3, %c0_4] : memref<1x128xf32, #tpu.memory_space<vmem>>, vector<1x128xf32>
    %4 = vector.broadcast %3 : vector<1x128xf32> to vector<128x128xf32>
    %5 = arith.addf %2, %4 : vector<128x128xf32>
    %c0_5 = arith.constant 0 : index
    %c0_6 = arith.constant 0 : index
    %6 = vector.load %arg7[%c0_5, %c0_6] : memref<128x128xf32, #tpu.memory_space<vmem>>, vector<128x128xf32>
    tpu.vector_store %arg7[%c0_5, %c0_6], %5 {strides = array<i32>} : memref<128x128xf32, #tpu.memory_space<vmem>>, vector<128x128xf32>,
    %c0_7 = arith.constant 0 : index
    %c0_8 = arith.constant 0 : index
    %7 = vector.load %arg2[%c0_7, %c0_8] : memref<128x128xf32, #tpu.memory_space<vmem>>, vector<128x128xf32>
    %c0_9 = arith.constant 0 : index
    %c0_10 = arith.constant 0 : index
    %8 = vector.load %arg5[%c0_9, %c0_10] : memref<128x128xf32, #tpu.memory_space<vmem>>, vector<128x128xf32>
    %cst_11 = arith.constant dense<0.000000e+00> : vector<128x128xf32>
    %9 = tpu.matmul %7, %8, %cst_11 {dimension_numbers = #tpu.dot_dimension_numbers<[1], [0], [0], [1], [0, 0, 1, 1], [], []>} : vector<128x128xf32>, vector<128x128xf32>, vector<128x128xf32> -> vector<128x128xf32>
    %c0_12 = arith.constant 0 : index
    %c0_13 = arith.constant 0 : index
    %10 = vector.load %arg6[%c0_12, %c0_13] : memref<1x128xf32, #tpu.memory_space<vmem>>, vector<1x128xf32>
    %11 = vector.broadcast %10 : vector<1x128xf32> to vector<128x128xf32>
    %12 = arith.addf %9, %11 : vector<128x128xf32>
    %c0_14 = arith.constant 0 : index
    %c0_15 = arith.constant 0 : index
    %13 = vector.load %arg8[%c0_14, %c0_15] : memref<128x128xf32, #tpu.memory_space<vmem>>, vector<128x128xf32>
    tpu.vector_store %arg8[%c0_14, %c0_15], %12 {strides = array<i32>} : memref<128x128xf32, #tpu.memory_space<vmem>>, vector<128x128xf32>,
    return
  }
  func.func @transform_0(%arg0: i32) -> (i32, i32) {
    %c0_i32 = arith.constant 0 : i32
    %c0_i32_0 = arith.constant 0 : i32
    return %arg0, %c0_i32 : i32, i32
  }
  func.func @transform_1(%arg0: i32) -> (i32, i32) {
    %c0_i32 = arith.constant 0 : i32
    %c0_i32_0 = arith.constant 0 : i32
    return %arg0, %c0_i32 : i32, i32
  }
  func.func @transform_2(%arg0: i32) -> (i32, i32) {
    %c0_i32 = arith.constant 0 : i32
    %c0_i32_0 = arith.constant 0 : i32
    %c0_i32_1 = arith.constant 0 : i32
    return %c0_i32, %c0_i32_0 : i32, i32
  }
  func.func @transform_3(%arg0: i32) -> (i32, i32) {
    %c0_i32 = arith.constant 0 : i32
    %c0_i32_0 = arith.constant 0 : i32
    %c0_i32_1 = arith.constant 0 : i32
    return %c0_i32, %c0_i32_0 : i32, i32
  }
  func.func @transform_4(%arg0: i32) -> (i32, i32) {
    %c0_i32 = arith.constant 0 : i32
    %c0_i32_0 = arith.constant 0 : i32
    %c0_i32_1 = arith.constant 0 : i32
    return %c0_i32, %c0_i32_0 : i32, i32
  }
  func.func @transform_5(%arg0: i32) -> (i32, i32) {
    %c0_i32 = arith.constant 0 : i32
    %c0_i32_0 = arith.constant 0 : i32
    %c0_i32_1 = arith.constant 0 : i32
    return %c0_i32, %c0_i32_0 : i32, i32
  }
  func.func @transform_6(%arg0: i32) -> (i32, i32) {
    %c0_i32 = arith.constant 0 : i32
    %c0_i32_0 = arith.constant 0 : i32
    return %arg0, %c0_i32 : i32, i32
  }
  func.func @transform_7(%arg0: i32) -> (i32, i32) {
    %c0_i32 = arith.constant 0 : i32
    %c0_i32_0 = arith.constant 0 : i32
    return %arg0, %c0_i32 : i32, i32
  }
}

module attributes {stable_mosaic.version = 11 : i64} {
  func.func @_tail_kernel(%arg0: i32, %arg1: memref<8x128xbf16, #tpu.memory_space<vmem>>, %arg2: memref<128x128xf32, #tpu.memory_space<vmem>>, %arg3: memref<128x128xf32, #tpu.memory_space<vmem>>, %arg4: memref<128x128xf32, #tpu.memory_space<vmem>>, %arg5: memref<128x128xf32, #tpu.memory_space<vmem>>, %arg6: memref<1x128xf32, #tpu.memory_space<vmem>>, %arg7: memref<128x128xf32, #tpu.memory_space<vmem>>, %arg8: memref<1x128xf32, #tpu.memory_space<vmem>>, %arg9: memref<128x128xf32, #tpu.memory_space<vmem>>, %arg10: memref<1x128xf32, #tpu.memory_space<vmem>>, %arg11: memref<8x128xf32, #tpu.memory_space<vmem>>, %arg12: memref<8x128xf32, #tpu.memory_space<vmem>>) attributes {dimension_semantics = [#tpu.dimension_semantics<arbitrary>], iteration_bounds = array<i64: 1>, scalar_prefetch = 0 : i64, scratch_operands = 1 : i64, tpu.core_type = #tpu.core_type<tc>, window_params = [{transform_indices = @transform_0, window_bounds = array<i64: 8, 128>}, {transform_indices = @transform_1, window_bounds = array<i64: 128, 128>}, {transform_indices = @transform_2, window_bounds = array<i64: 128, 128>}, {pipeline_mode = #tpu.pipeline_mode<synchronous>, transform_indices = @transform_3, window_bounds = array<i64: 128, 128>}, {pipeline_mode = #tpu.pipeline_mode<synchronous>, transform_indices = @transform_4, window_bounds = array<i64: 128, 128>}, {pipeline_mode = #tpu.pipeline_mode<synchronous>, transform_indices = @transform_5, window_bounds = array<i64: 1, 128>}, {pipeline_mode = #tpu.pipeline_mode<synchronous>, transform_indices = @transform_6, window_bounds = array<i64: 128, 128>}, {pipeline_mode = #tpu.pipeline_mode<synchronous>, transform_indices = @transform_7, window_bounds = array<i64: 1, 128>}, {pipeline_mode = #tpu.pipeline_mode<synchronous>, transform_indices = @transform_8, window_bounds = array<i64: 128, 128>}, {pipeline_mode = #tpu.pipeline_mode<synchronous>, transform_indices = @transform_9, window_bounds = array<i64: 1, 128>}, {pipeline_mode = #tpu.pipeline_mode<synchronous>, transform_indices = @transform_10, window_bounds = array<i64: 8, 128>}]} {
    %c0_i32 = arith.constant 0 : i32
    %0 = arith.cmpi eq, %arg0, %c0_i32 : i32
    %1 = arith.extui %0 : i1 to i32
    %c0_i32_0 = arith.constant 0 : i32
    %2 = arith.cmpi ne, %1, %c0_i32_0 : i32
    scf.if %2 {
      %cst_20 = arith.constant 0.000000e+00 : f32
      %22 = vector.broadcast %cst_20 : f32 to vector<8x128xf32>
      %c0_21 = arith.constant 0 : index
      %c0_22 = arith.constant 0 : index
      %23 = vector.load %arg12[%c0_21, %c0_22] : memref<8x128xf32, #tpu.memory_space<vmem>>, vector<8x128xf32>
      tpu.vector_store %arg12[%c0_21, %c0_22], %22 {strides = array<i32>} : memref<8x128xf32, #tpu.memory_space<vmem>>, vector<8x128xf32>,
    } else {
    }
    %c0 = arith.constant 0 : index
    %c0_1 = arith.constant 0 : index
    %3 = vector.load %arg2[%c0, %c0_1] : memref<128x128xf32, #tpu.memory_space<vmem>>, vector<128x128xf32>
    %c0_2 = arith.constant 0 : index
    %c0_3 = arith.constant 0 : index
    %4 = vector.load %arg4[%c0_2, %c0_3] : memref<128x128xf32, #tpu.memory_space<vmem>>, vector<128x128xf32>
    %cst = arith.constant dense<0.000000e+00> : vector<128x128xf32>
    %5 = tpu.matmul %3, %4, %cst {dimension_numbers = #tpu.dot_dimension_numbers<[1], [0], [0], [1], [0, 0, 1, 1], [], []>} : vector<128x128xf32>, vector<128x128xf32>, vector<128x128xf32> -> vector<128x128xf32>
    %c0_4 = arith.constant 0 : index
    %c0_5 = arith.constant 0 : index
    %6 = vector.load %arg3[%c0_4, %c0_5] : memref<128x128xf32, #tpu.memory_space<vmem>>, vector<128x128xf32>
    %c0_6 = arith.constant 0 : index
    %c0_7 = arith.constant 0 : index
    %7 = vector.load %arg5[%c0_6, %c0_7] : memref<128x128xf32, #tpu.memory_space<vmem>>, vector<128x128xf32>
    %cst_8 = arith.constant dense<0.000000e+00> : vector<128x128xf32>
    %8 = tpu.matmul %6, %7, %cst_8 {dimension_numbers = #tpu.dot_dimension_numbers<[1], [0], [0], [1], [0, 0, 1, 1], [], []>} : vector<128x128xf32>, vector<128x128xf32>, vector<128x128xf32> -> vector<128x128xf32>
    %9 = arith.addf %5, %8 : vector<128x128xf32>
    %c0_9 = arith.constant 0 : index
    %c0_10 = arith.constant 0 : index
    %10 = vector.load %arg6[%c0_9, %c0_10] : memref<1x128xf32, #tpu.memory_space<vmem>>, vector<1x128xf32>
    %11 = vector.broadcast %10 : vector<1x128xf32> to vector<128x128xf32>
    %12 = arith.addf %9, %11 : vector<128x128xf32>
    %c0_11 = arith.constant 0 : index
    %c0_12 = arith.constant 0 : index
    %13 = vector.load %arg12[%c0_11, %c0_12] : memref<8x128xf32, #tpu.memory_space<vmem>>, vector<8x128xf32>
    %c0_13 = arith.constant 0 : index
    %c0_14 = arith.constant 0 : index
    %14 = vector.load %arg1[%c0_13, %c0_14] : memref<8x128xbf16, #tpu.memory_space<vmem>>, vector<8x128xbf16>
    %15 = arith.truncf %12 : vector<128x128xf32> to vector<128x128xbf16>
    %cst_15 = arith.constant dense<0.000000e+00> : vector<8x128xf32>
    %16 = tpu.matmul %14, %15, %cst_15 {dimension_numbers = #tpu.dot_dimension_numbers<[1], [0], [0], [1], [0, 0, 1, 1], [], []>} : vector<8x128xbf16>, vector<128x128xbf16>, vector<8x128xf32> -> vector<8x128xf32>
    %17 = arith.addf %13, %16 : vector<8x128xf32>
    %c0_16 = arith.constant 0 : index
    %c0_17 = arith.constant 0 : index
    %18 = vector.load %arg12[%c0_16, %c0_17] : memref<8x128xf32, #tpu.memory_space<vmem>>, vector<8x128xf32>
    tpu.vector_store %arg12[%c0_16, %c0_17], %17 {strides = array<i32>} : memref<8x128xf32, #tpu.memory_space<vmem>>, vector<8x128xf32>,
    %c0_i32_18 = arith.constant 0 : i32
    %19 = arith.cmpi eq, %arg0, %c0_i32_18 : i32
    %20 = arith.extui %19 : i1 to i32
    %c0_i32_19 = arith.constant 0 : i32
    %21 = arith.cmpi ne, %20, %c0_i32_19 : i32
    scf.if %21 {
      %c0_20 = arith.constant 0 : index
      %c0_21 = arith.constant 0 : index
      %22 = vector.load %arg12[%c0_20, %c0_21] : memref<8x128xf32, #tpu.memory_space<vmem>>, vector<8x128xf32>
      %c0_22 = arith.constant 0 : index
      %c0_23 = arith.constant 0 : index
      %23 = vector.load %arg7[%c0_22, %c0_23] : memref<128x128xf32, #tpu.memory_space<vmem>>, vector<128x128xf32>
      %cst_24 = arith.constant dense<0.000000e+00> : vector<8x128xf32>
      %24 = tpu.matmul %22, %23, %cst_24 {dimension_numbers = #tpu.dot_dimension_numbers<[1], [0], [0], [1], [0, 0, 1, 1], [], []>} : vector<8x128xf32>, vector<128x128xf32>, vector<8x128xf32> -> vector<8x128xf32>
      %c0_25 = arith.constant 0 : index
      %c0_26 = arith.constant 0 : index
      %25 = vector.load %arg8[%c0_25, %c0_26] : memref<1x128xf32, #tpu.memory_space<vmem>>, vector<1x128xf32>
      %26 = vector.broadcast %25 : vector<1x128xf32> to vector<8x128xf32>
      %27 = arith.addf %24, %26 : vector<8x128xf32>
      %cst_27 = arith.constant 0.000000e+00 : f32
      %28 = vector.broadcast %cst_27 : f32 to vector<8x128xf32>
      %29 = arith.maximumf %27, %28 : vector<8x128xf32>
      %c0_28 = arith.constant 0 : index
      %c0_29 = arith.constant 0 : index
      %30 = vector.load %arg9[%c0_28, %c0_29] : memref<128x128xf32, #tpu.memory_space<vmem>>, vector<128x128xf32>
      %cst_30 = arith.constant dense<0.000000e+00> : vector<8x128xf32>
      %31 = tpu.matmul %29, %30, %cst_30 {dimension_numbers = #tpu.dot_dimension_numbers<[1], [0], [0], [1], [0, 0, 1, 1], [], []>} : vector<8x128xf32>, vector<128x128xf32>, vector<8x128xf32> -> vector<8x128xf32>
      %c0_31 = arith.constant 0 : index
      %c0_32 = arith.constant 0 : index
      %32 = vector.load %arg10[%c0_31, %c0_32] : memref<1x128xf32, #tpu.memory_space<vmem>>, vector<1x128xf32>
      %33 = vector.broadcast %32 : vector<1x128xf32> to vector<8x128xf32>
      %34 = arith.addf %31, %33 : vector<8x128xf32>
      %35 = tpu.iota {dimensions = array<i32: 1>} : vector<8x128xi32>
      %c3_i32 = arith.constant 3 : i32
      %36 = vector.broadcast %c3_i32 : i32 to vector<8x128xi32>
      %37 = arith.cmpi slt, %35, %36 : vector<8x128xi32>
      %cst_33 = arith.constant -1.000000e+30 : f32
      %38 = vector.broadcast %cst_33 : f32 to vector<8x128xf32>
      %39 = arith.select %37, %34, %38 : vector<8x128xi1>, vector<8x128xf32>
      %cst_34 = arith.constant dense<0xFF800000> : vector<8xf32>
      %40 = vector.multi_reduction <maximumf>, %39, %cst_34 [1] : vector<8x128xf32> to vector<8xf32>
      %41 = vector.shape_cast %40 : vector<8xf32> to vector<8x1xf32>
      %42 = vector.broadcast %41 : vector<8x1xf32> to vector<8x128xf32>
      %43 = arith.subf %39, %42 : vector<8x128xf32>
      %44 = math.exp %43 : vector<8x128xf32>
      %cst_35 = arith.constant dense<0.000000e+00> : vector<8xf32>
      %45 = vector.multi_reduction <add>, %44, %cst_35 [1] : vector<8x128xf32> to vector<8xf32>
      %46 = vector.shape_cast %45 : vector<8xf32> to vector<8x1xf32>
      %47 = math.log %46 : vector<8x1xf32>
      %48 = vector.broadcast %47 : vector<8x1xf32> to vector<8x128xf32>
      %49 = arith.subf %43, %48 : vector<8x128xf32>
      %c0_36 = arith.constant 0 : index
      %c0_37 = arith.constant 0 : index
      %50 = vector.load %arg11[%c0_36, %c0_37] : memref<8x128xf32, #tpu.memory_space<vmem>>, vector<8x128xf32>
      tpu.vector_store %arg11[%c0_36, %c0_37], %49 {strides = array<i32>} : memref<8x128xf32, #tpu.memory_space<vmem>>, vector<8x128xf32>,
    } else {
    }
    return
  }
  func.func @transform_0(%arg0: i32) -> (i32, i32) {
    %c0_i32 = arith.constant 0 : i32
    %c0_i32_0 = arith.constant 0 : i32
    return %c0_i32, %arg0 : i32, i32
  }
  func.func @transform_1(%arg0: i32) -> (i32, i32) {
    %c0_i32 = arith.constant 0 : i32
    %c0_i32_0 = arith.constant 0 : i32
    return %arg0, %c0_i32 : i32, i32
  }
  func.func @transform_2(%arg0: i32) -> (i32, i32) {
    %c0_i32 = arith.constant 0 : i32
    %c0_i32_0 = arith.constant 0 : i32
    return %arg0, %c0_i32 : i32, i32
  }
  func.func @transform_3(%arg0: i32) -> (i32, i32) {
    %c0_i32 = arith.constant 0 : i32
    %c0_i32_0 = arith.constant 0 : i32
    %c0_i32_1 = arith.constant 0 : i32
    return %c0_i32, %c0_i32_0 : i32, i32
  }
  func.func @transform_4(%arg0: i32) -> (i32, i32) {
    %c0_i32 = arith.constant 0 : i32
    %c0_i32_0 = arith.constant 0 : i32
    %c0_i32_1 = arith.constant 0 : i32
    return %c0_i32, %c0_i32_0 : i32, i32
  }
  func.func @transform_5(%arg0: i32) -> (i32, i32) {
    %c0_i32 = arith.constant 0 : i32
    %c0_i32_0 = arith.constant 0 : i32
    %c0_i32_1 = arith.constant 0 : i32
    return %c0_i32, %c0_i32_0 : i32, i32
  }
  func.func @transform_6(%arg0: i32) -> (i32, i32) {
    %c0_i32 = arith.constant 0 : i32
    %c0_i32_0 = arith.constant 0 : i32
    %c0_i32_1 = arith.constant 0 : i32
    return %c0_i32, %c0_i32_0 : i32, i32
  }
  func.func @transform_7(%arg0: i32) -> (i32, i32) {
    %c0_i32 = arith.constant 0 : i32
    %c0_i32_0 = arith.constant 0 : i32
    %c0_i32_1 = arith.constant 0 : i32
    return %c0_i32, %c0_i32_0 : i32, i32
  }
  func.func @transform_8(%arg0: i32) -> (i32, i32) {
    %c0_i32 = arith.constant 0 : i32
    %c0_i32_0 = arith.constant 0 : i32
    %c0_i32_1 = arith.constant 0 : i32
    return %c0_i32, %c0_i32_0 : i32, i32
  }
  func.func @transform_9(%arg0: i32) -> (i32, i32) {
    %c0_i32 = arith.constant 0 : i32
    %c0_i32_0 = arith.constant 0 : i32
    %c0_i32_1 = arith.constant 0 : i32
    return %c0_i32, %c0_i32_0 : i32, i32
  }
  func.func @transform_10(%arg0: i32) -> (i32, i32) {
    %c0_i32 = arith.constant 0 : i32
    %c0_i32_0 = arith.constant 0 : i32
    %c0_i32_1 = arith.constant 0 : i32
    return %c0_i32, %c0_i32_0 : i32, i32
  }
}

module attributes {stable_mosaic.version = 11 : i64} {
  func.func @_layer_kernel(%arg0: i32, %arg1: i32, %arg2: memref<128x128xbf16, #tpu.memory_space<vmem>>, %arg3: memref<128x128xbf16, #tpu.memory_space<vmem>>, %arg4: memref<128x128xf32, #tpu.memory_space<vmem>>, %arg5: memref<128x128xf32, #tpu.memory_space<vmem>>, %arg6: memref<128x128xf32, #tpu.memory_space<vmem>>, %arg7: memref<128x128xf32, #tpu.memory_space<vmem>>, %arg8: memref<1x128xf32, #tpu.memory_space<vmem>>, %arg9: memref<128x128xf32, #tpu.memory_space<vmem>>, %arg10: memref<1x128xf32, #tpu.memory_space<vmem>>, %arg11: memref<128x128xf32, #tpu.memory_space<vmem>>, %arg12: memref<1x128xf32, #tpu.memory_space<vmem>>, %arg13: memref<128x128xf32, #tpu.memory_space<vmem>>, %arg14: memref<128x128xf32, #tpu.memory_space<vmem>>, %arg15: memref<128x128xf32, #tpu.memory_space<vmem>>, %arg16: memref<128x128xf32, #tpu.memory_space<vmem>>) attributes {dimension_semantics = [#tpu.dimension_semantics<parallel>, #tpu.dimension_semantics<arbitrary>], iteration_bounds = array<i64: 1, 1>, scalar_prefetch = 0 : i64, scratch_operands = 2 : i64, tpu.core_type = #tpu.core_type<tc>, window_params = [{transform_indices = @transform_0, window_bounds = array<i64: 128, 128>}, {transform_indices = @transform_1, window_bounds = array<i64: 128, 128>}, {transform_indices = @transform_2, window_bounds = array<i64: 128, 128>}, {transform_indices = @transform_3, window_bounds = array<i64: 128, 128>}, {pipeline_mode = #tpu.pipeline_mode<synchronous>, transform_indices = @transform_4, window_bounds = array<i64: 128, 128>}, {pipeline_mode = #tpu.pipeline_mode<synchronous>, transform_indices = @transform_5, window_bounds = array<i64: 128, 128>}, {pipeline_mode = #tpu.pipeline_mode<synchronous>, transform_indices = @transform_6, window_bounds = array<i64: 1, 128>}, {pipeline_mode = #tpu.pipeline_mode<synchronous>, transform_indices = @transform_7, window_bounds = array<i64: 128, 128>}, {pipeline_mode = #tpu.pipeline_mode<synchronous>, transform_indices = @transform_8, window_bounds = array<i64: 1, 128>}, {pipeline_mode = #tpu.pipeline_mode<synchronous>, transform_indices = @transform_9, window_bounds = array<i64: 128, 128>}, {pipeline_mode = #tpu.pipeline_mode<synchronous>, transform_indices = @transform_10, window_bounds = array<i64: 1, 128>}, {transform_indices = @transform_11, window_bounds = array<i64: 128, 128>}, {transform_indices = @transform_12, window_bounds = array<i64: 128, 128>}]} {
    %c0_i32 = arith.constant 0 : i32
    %0 = arith.cmpi eq, %arg1, %c0_i32 : i32
    %1 = arith.extui %0 : i1 to i32
    %c0_i32_0 = arith.constant 0 : i32
    %2 = arith.cmpi ne, %1, %c0_i32_0 : i32
    scf.if %2 {
      %cst_28 = arith.constant 0.000000e+00 : f32
      %27 = vector.broadcast %cst_28 : f32 to vector<128x128xf32>
      %c0_29 = arith.constant 0 : index
      %c0_30 = arith.constant 0 : index
      %28 = vector.load %arg15[%c0_29, %c0_30] : memref<128x128xf32, #tpu.memory_space<vmem>>, vector<128x128xf32>
      tpu.vector_store %arg15[%c0_29, %c0_30], %27 {strides = array<i32>} : memref<128x128xf32, #tpu.memory_space<vmem>>, vector<128x128xf32>,
      %cst_31 = arith.constant 0.000000e+00 : f32
      %29 = vector.broadcast %cst_31 : f32 to vector<128x128xf32>
      %c0_32 = arith.constant 0 : index
      %c0_33 = arith.constant 0 : index
      %30 = vector.load %arg16[%c0_32, %c0_33] : memref<128x128xf32, #tpu.memory_space<vmem>>, vector<128x128xf32>
      tpu.vector_store %arg16[%c0_32, %c0_33], %29 {strides = array<i32>} : memref<128x128xf32, #tpu.memory_space<vmem>>, vector<128x128xf32>,
    } else {
    }
    %c0 = arith.constant 0 : index
    %c0_1 = arith.constant 0 : index
    %3 = vector.load %arg4[%c0, %c0_1] : memref<128x128xf32, #tpu.memory_space<vmem>>, vector<128x128xf32>
    %c0_2 = arith.constant 0 : index
    %c0_3 = arith.constant 0 : index
    %4 = vector.load %arg5[%c0_2, %c0_3] : memref<128x128xf32, #tpu.memory_space<vmem>>, vector<128x128xf32>
    %c0_4 = arith.constant 0 : index
    %c0_5 = arith.constant 0 : index
    %5 = vector.load %arg6[%c0_4, %c0_5] : memref<128x128xf32, #tpu.memory_space<vmem>>, vector<128x128xf32>
    %cst = arith.constant dense<0.000000e+00> : vector<128x128xf32>
    %6 = tpu.matmul %3, %5, %cst {dimension_numbers = #tpu.dot_dimension_numbers<[1], [0], [0], [1], [0, 0, 1, 1], [], []>} : vector<128x128xf32>, vector<128x128xf32>, vector<128x128xf32> -> vector<128x128xf32>
    %c0_6 = arith.constant 0 : index
    %c0_7 = arith.constant 0 : index
    %7 = vector.load %arg7[%c0_6, %c0_7] : memref<128x128xf32, #tpu.memory_space<vmem>>, vector<128x128xf32>
    %cst_8 = arith.constant dense<0.000000e+00> : vector<128x128xf32>
    %8 = tpu.matmul %4, %7, %cst_8 {dimension_numbers = #tpu.dot_dimension_numbers<[1], [0], [0], [1], [0, 0, 1, 1], [], []>} : vector<128x128xf32>, vector<128x128xf32>, vector<128x128xf32> -> vector<128x128xf32>
    %9 = arith.addf %6, %8 : vector<128x128xf32>
    %c0_9 = arith.constant 0 : index
    %c0_10 = arith.constant 0 : index
    %10 = vector.load %arg15[%c0_9, %c0_10] : memref<128x128xf32, #tpu.memory_space<vmem>>, vector<128x128xf32>
    %c0_11 = arith.constant 0 : index
    %c0_12 = arith.constant 0 : index
    %11 = vector.load %arg2[%c0_11, %c0_12] : memref<128x128xbf16, #tpu.memory_space<vmem>>, vector<128x128xbf16>
    %12 = arith.truncf %9 : vector<128x128xf32> to vector<128x128xbf16>
    %cst_13 = arith.constant dense<0.000000e+00> : vector<128x128xf32>
    %13 = tpu.matmul %11, %12, %cst_13 {dimension_numbers = #tpu.dot_dimension_numbers<[1], [0], [0], [1], [0, 0, 1, 1], [], []>} : vector<128x128xbf16>, vector<128x128xbf16>, vector<128x128xf32> -> vector<128x128xf32>
    %14 = arith.addf %10, %13 : vector<128x128xf32>
    %c0_14 = arith.constant 0 : index
    %c0_15 = arith.constant 0 : index
    %15 = vector.load %arg15[%c0_14, %c0_15] : memref<128x128xf32, #tpu.memory_space<vmem>>, vector<128x128xf32>
    tpu.vector_store %arg15[%c0_14, %c0_15], %14 {strides = array<i32>} : memref<128x128xf32, #tpu.memory_space<vmem>>, vector<128x128xf32>,
    %c0_16 = arith.constant 0 : index
    %c0_17 = arith.constant 0 : index
    %16 = vector.load %arg11[%c0_16, %c0_17] : memref<128x128xf32, #tpu.memory_space<vmem>>, vector<128x128xf32>
    %cst_18 = arith.constant dense<0.000000e+00> : vector<128x128xf32>
    %17 = tpu.matmul %4, %16, %cst_18 {dimension_numbers = #tpu.dot_dimension_numbers<[1], [0], [0], [1], [0, 0, 1, 1], [], []>} : vector<128x128xf32>, vector<128x128xf32>, vector<128x128xf32> -> vector<128x128xf32>
    %c0_19 = arith.constant 0 : index
    %c0_20 = arith.constant 0 : index
    %18 = vector.load %arg16[%c0_19, %c0_20] : memref<128x128xf32, #tpu.memory_space<vmem>>, vector<128x128xf32>
    %c0_21 = arith.constant 0 : index
    %c0_22 = arith.constant 0 : index
    %19 = vector.load %arg3[%c0_21, %c0_22] : memref<128x128xbf16, #tpu.memory_space<vmem>>, vector<128x128xbf16>
    %20 = arith.truncf %17 : vector<128x128xf32> to vector<128x128xbf16>
    %cst_23 = arith.constant dense<0.000000e+00> : vector<128x128xf32>
    %21 = tpu.matmul %19, %20, %cst_23 {dimension_numbers = #tpu.dot_dimension_numbers<[1], [0], [0], [1], [0, 0, 1, 1], [], []>} : vector<128x128xbf16>, vector<128x128xbf16>, vector<128x128xf32> -> vector<128x128xf32>
    %22 = arith.addf %18, %21 : vector<128x128xf32>
    %c0_24 = arith.constant 0 : index
    %c0_25 = arith.constant 0 : index
    %23 = vector.load %arg16[%c0_24, %c0_25] : memref<128x128xf32, #tpu.memory_space<vmem>>, vector<128x128xf32>
    tpu.vector_store %arg16[%c0_24, %c0_25], %22 {strides = array<i32>} : memref<128x128xf32, #tpu.memory_space<vmem>>, vector<128x128xf32>,
    %c0_i32_26 = arith.constant 0 : i32
    %24 = arith.cmpi eq, %arg1, %c0_i32_26 : i32
    %25 = arith.extui %24 : i1 to i32
    %c0_i32_27 = arith.constant 0 : i32
    %26 = arith.cmpi ne, %25, %c0_i32_27 : i32
    scf.if %26 {
      %c0_28 = arith.constant 0 : index
      %c0_29 = arith.constant 0 : index
      %27 = vector.load %arg15[%c0_28, %c0_29] : memref<128x128xf32, #tpu.memory_space<vmem>>, vector<128x128xf32>
      %c0_30 = arith.constant 0 : index
      %c0_31 = arith.constant 0 : index
      %28 = vector.load %arg8[%c0_30, %c0_31] : memref<1x128xf32, #tpu.memory_space<vmem>>, vector<1x128xf32>
      %29 = vector.broadcast %28 : vector<1x128xf32> to vector<128x128xf32>
      %30 = arith.addf %27, %29 : vector<128x128xf32>
      %cst_32 = arith.constant 0.000000e+00 : f32
      %31 = vector.broadcast %cst_32 : f32 to vector<128x128xf32>
      %32 = arith.maximumf %30, %31 : vector<128x128xf32>
      %c0_33 = arith.constant 0 : index
      %c0_34 = arith.constant 0 : index
      %33 = vector.load %arg9[%c0_33, %c0_34] : memref<128x128xf32, #tpu.memory_space<vmem>>, vector<128x128xf32>
      %cst_35 = arith.constant dense<0.000000e+00> : vector<128x128xf32>
      %34 = tpu.matmul %32, %33, %cst_35 {dimension_numbers = #tpu.dot_dimension_numbers<[1], [0], [0], [1], [0, 0, 1, 1], [], []>} : vector<128x128xf32>, vector<128x128xf32>, vector<128x128xf32> -> vector<128x128xf32>
      %c0_36 = arith.constant 0 : index
      %c0_37 = arith.constant 0 : index
      %35 = vector.load %arg10[%c0_36, %c0_37] : memref<1x128xf32, #tpu.memory_space<vmem>>, vector<1x128xf32>
      %36 = vector.broadcast %35 : vector<1x128xf32> to vector<128x128xf32>
      %37 = arith.addf %34, %36 : vector<128x128xf32>
      %cst_38 = arith.constant 0.000000e+00 : f32
      %38 = vector.broadcast %cst_38 : f32 to vector<128x128xf32>
      %39 = arith.maximumf %37, %38 : vector<128x128xf32>
      %c0_39 = arith.constant 0 : index
      %c0_40 = arith.constant 0 : index
      %40 = vector.load %arg13[%c0_39, %c0_40] : memref<128x128xf32, #tpu.memory_space<vmem>>, vector<128x128xf32>
      tpu.vector_store %arg13[%c0_39, %c0_40], %39 {strides = array<i32>} : memref<128x128xf32, #tpu.memory_space<vmem>>, vector<128x128xf32>,
      %c0_41 = arith.constant 0 : index
      %c0_42 = arith.constant 0 : index
      %41 = vector.load %arg16[%c0_41, %c0_42] : memref<128x128xf32, #tpu.memory_space<vmem>>, vector<128x128xf32>
      %c0_43 = arith.constant 0 : index
      %c0_44 = arith.constant 0 : index
      %42 = vector.load %arg12[%c0_43, %c0_44] : memref<1x128xf32, #tpu.memory_space<vmem>>, vector<1x128xf32>
      %43 = vector.broadcast %42 : vector<1x128xf32> to vector<128x128xf32>
      %44 = arith.addf %41, %43 : vector<128x128xf32>
      %45 = math.tanh %44 : vector<128x128xf32>
      %c0_45 = arith.constant 0 : index
      %c0_46 = arith.constant 0 : index
      %46 = vector.load %arg14[%c0_45, %c0_46] : memref<128x128xf32, #tpu.memory_space<vmem>>, vector<128x128xf32>
      tpu.vector_store %arg14[%c0_45, %c0_46], %45 {strides = array<i32>} : memref<128x128xf32, #tpu.memory_space<vmem>>, vector<128x128xf32>,
    } else {
    }
    return
  }
  func.func @transform_0(%arg0: i32, %arg1: i32) -> (i32, i32) {
    %c0_i32 = arith.constant 0 : i32
    return %arg0, %arg1 : i32, i32
  }
  func.func @transform_1(%arg0: i32, %arg1: i32) -> (i32, i32) {
    %c0_i32 = arith.constant 0 : i32
    return %arg0, %arg1 : i32, i32
  }
  func.func @transform_2(%arg0: i32, %arg1: i32) -> (i32, i32) {
    %c0_i32 = arith.constant 0 : i32
    %c0_i32_0 = arith.constant 0 : i32
    return %arg1, %c0_i32 : i32, i32
  }
  func.func @transform_3(%arg0: i32, %arg1: i32) -> (i32, i32) {
    %c0_i32 = arith.constant 0 : i32
    %c0_i32_0 = arith.constant 0 : i32
    return %arg1, %c0_i32 : i32, i32
  }
  func.func @transform_4(%arg0: i32, %arg1: i32) -> (i32, i32) {
    %c0_i32 = arith.constant 0 : i32
    %c0_i32_0 = arith.constant 0 : i32
    %c0_i32_1 = arith.constant 0 : i32
    return %c0_i32, %c0_i32_0 : i32, i32
  }
  func.func @transform_5(%arg0: i32, %arg1: i32) -> (i32, i32) {
    %c0_i32 = arith.constant 0 : i32
    %c0_i32_0 = arith.constant 0 : i32
    %c0_i32_1 = arith.constant 0 : i32
    return %c0_i32, %c0_i32_0 : i32, i32
  }
  func.func @transform_6(%arg0: i32, %arg1: i32) -> (i32, i32) {
    %c0_i32 = arith.constant 0 : i32
    %c0_i32_0 = arith.constant 0 : i32
    %c0_i32_1 = arith.constant 0 : i32
    return %c0_i32, %c0_i32_0 : i32, i32
  }
  func.func @transform_7(%arg0: i32, %arg1: i32) -> (i32, i32) {
    %c0_i32 = arith.constant 0 : i32
    %c0_i32_0 = arith.constant 0 : i32
    %c0_i32_1 = arith.constant 0 : i32
    return %c0_i32, %c0_i32_0 : i32, i32
  }
  func.func @transform_8(%arg0: i32, %arg1: i32) -> (i32, i32) {
    %c0_i32 = arith.constant 0 : i32
    %c0_i32_0 = arith.constant 0 : i32
    %c0_i32_1 = arith.constant 0 : i32
    return %c0_i32, %c0_i32_0 : i32, i32
  }
  func.func @transform_9(%arg0: i32, %arg1: i32) -> (i32, i32) {
    %c0_i32 = arith.constant 0 : i32
    %c0_i32_0 = arith.constant 0 : i32
    %c0_i32_1 = arith.constant 0 : i32
    return %c0_i32, %c0_i32_0 : i32, i32
  }
  func.func @transform_10(%arg0: i32, %arg1: i32) -> (i32, i32) {
    %c0_i32 = arith.constant 0 : i32
    %c0_i32_0 = arith.constant 0 : i32
    %c0_i32_1 = arith.constant 0 : i32
    return %c0_i32, %c0_i32_0 : i32, i32
  }
  func.func @transform_11(%arg0: i32, %arg1: i32) -> (i32, i32) {
    %c0_i32 = arith.constant 0 : i32
    %c0_i32_0 = arith.constant 0 : i32
    return %arg0, %c0_i32 : i32, i32
  }
  func.func @transform_12(%arg0: i32, %arg1: i32) -> (i32, i32) {
    %c0_i32 = arith.constant 0 : i32
    %c0_i32_0 = arith.constant 0 : i32
    return %arg0, %c0_i32 : i32, i32
  }
}

</mosaic_0001>

<bundles_post_ra>
// kernel: gin_dc_forward.7
= control target key start
LH: loop header
LB: loop body
LE: loop exit
PB: predicated region body
PF: predicated region fallthrough
CT: control target
= control target key end

     0   :  { %15 = vsyncpa [#allocation4], 0  ;;  %s857_s0 = inlined_call_operand.vmem [shape: bf16[8,128], index: 0, kind: input, shape index: {}]   ;;  %s858_s1 = inlined_call_operand.vmem [shape: f32[128,128], index: 1, kind: input, shape index: {}]   ;;  %s859_s2 = inlined_call_operand.vmem [shape: f32[128,128], index: 2, kind: input, shape index: {}]   ;;  %s860_s3 = inlined_call_operand.hbm [shape: f32[128,128], index: 3, kind: input, shape index: {}]   ;;  %s861_s4 = inlined_call_operand.hbm [shape: f32[128,128], index: 4, kind: input, shape index: {}]   ;;  %s862_s5 = inlined_call_operand.vmem [shape: f32[1,128], index: 5, kind: input, shape index: {}]   ;;  %s863_s6 = inlined_call_operand.hbm [shape: f32[128,128], index: 6, kind: input, shape index: {}]   ;;  %s864_s7 = inlined_call_operand.vmem [shape: f32[1,128], index: 7, kind: input, shape index: {}]   ;;  %s865_s8 = inlined_call_operand.hbm [shape: f32[128,128], index: 8, kind: input, shape index: {}]   ;;  %s866_s9 = inlined_call_operand.vmem [shape: f32[1,128], index: 9, kind: input, shape index: {}]   ;;  %s867_s10 = inlined_call_operand.hbm [shape: f32[8,128], index: 10, kind: output, shape index: {}]  }
   0x1   :  { %16 = vsyncpa [#allocation7], 0 }
   0x2   :  { %17 = vsyncpa [#allocation10], 0 }
   0x3   :  { %18 = vsyncpa [#allocation5], 0  ;;  %s42_s15 = sshll.u32 %s861_s4, 4  ;;  %s636_s16 = smov [#allocation6]   ;;  %s43_s15 = int_to_ptr.hbm [resolvable:$true] %s42_s15 }
   0x4   :  { %s44_s17 = sshll.u32 %s636_s16, 4  ;;  %s29_s20 = sshll.u32 %s860_s3, 4  ;;  %s45_s17 = int_to_ptr.vmem [resolvable:$true] %s44_s17  ;;  %s30_s20 = int_to_ptr.hbm [resolvable:$true] %s29_s20 }
   0x5   :  { %s637_s21 = smov 128   ;;  %s638_s22 = smov 8  }
   0x6   :  { %50 = dma.hbm_to_vmem [thread:$0]  %s43_s15, 2048, %s45_s17, [#allocation7], %s637_s21, %s637_s21, %s638_s22  }
   0x7   :  { %s639_s23 = smov [#allocation3]   ;;  %s57_s27 = sshll.u32 %s863_s6, 4  ;;  %s58_s27 = int_to_ptr.hbm [resolvable:$true] %s57_s27 }
   0x8   :  { %s31_s24 = sshll.u32 %s639_s23, 4  ;;  %s72_s29 = sshll.u32 %s865_s8, 4  ;;  %s32_s24 = int_to_ptr.vmem [resolvable:$true] %s31_s24  ;;  %s73_s29 = int_to_ptr.hbm [resolvable:$true] %s72_s29 }
   0x9   :  { %37 = dma.hbm_to_vmem [thread:$0]  %s30_s20, 2048, %s32_s24, [#allocation4], %s637_s21, %s637_s21, %s638_s22  }
   0xa   :  { %s640_s30 = smov [#allocation8]   ;;  %s641_s3 = smov [#allocation9]  }
   0xb   :  { %s59_s11 = sshll.u32 %s640_s30, 4  ;;  %s74_s12 = sshll.u32 %s641_s3, 4  ;;  %s60_s11 = int_to_ptr.vmem [resolvable:$true] %s59_s11  ;;  %s75_s12 = int_to_ptr.vmem [resolvable:$true] %s74_s12 }
   0xc   :  { %65 = dma.hbm_to_vmem [thread:$0]  %s58_s27, 2048, %s60_s11, [#allocation7], %s637_s21, %s637_s21, %s638_s22  }
   0xd   :  { %80 = dma.hbm_to_vmem [thread:$0]  %s73_s29, 2048, %s75_s12, [#allocation10], %s637_s21, %s637_s21, %s638_s22  }
   0xe   :  { %628 = dma.done.wait [#allocation4], 2048  }
   0xf   :  { %629 = vsyncadd [#allocation4], 4294965248 }
  0x10   :  { %630 = dma.done.wait [#allocation7], 4096  }
  0x11   :  { %631 = vsyncadd [#allocation7], 4294963200 }
  0x12   :  { %632 = dma.done.wait [#allocation10], 2048  }
  0x13   :  { %633 = vsyncadd [#allocation10], 4294965248  ;;  %v167_v0 = vld [vmem:[#allocation6 + $0x78] sm:$0xff]  ;;  %v166_v2 = vld [vmem:[#allocation6 + $0x70] sm:$0xff] }
  0x14   :  { %v135_v1 = vld [vmem:[#allocation3 + $0x78] sm:$0xff]  ;;  %168 = vmatpush.msra.mxu0 %v167_v0  ;;  %462 = vmatpush.msra.mxu3 %v167_v0  ;;  %v134_v3 = vld [vmem:[#allocation3 + $0x70] sm:$0xff]  ;;  %v165_v4 = vld [vmem:[#allocation6 + $0x68] sm:$0xff] }
  0x15   :  { %233 = vmatpush.msra.mxu1 %v135_v1  ;;  %478 = vmatpush.msra.mxu2 %v135_v1  ;;  %v133_v5 = vld [vmem:[#allocation3 + $0x68] sm:$0xff]  ;;  %v164_v6 = vld [vmem:[#allocation6 + $0x60] sm:$0xff]  ;;  %v163_v8 = vld [vmem:[#allocation6 + $0x58] sm:$0xff] }
  0x16   :  { %169 = vmatpush.msra.mxu0 %v166_v2  ;;  %463 = vmatpush.msra.mxu3 %v166_v2  ;;  %v132_v7 = vld [vmem:[#allocation3 + $0x60] sm:$0xff]  ;;  %v131_v9 = vld [vmem:[#allocation3 + $0x58] sm:$0xff]  ;;  %v162_v10 = vld [vmem:[#allocation6 + $0x50] sm:$0xff] }
  0x17   :  { %234 = vmatpush.msra.mxu1 %v134_v3  ;;  %479 = vmatpush.msra.mxu2 %v134_v3  ;;  %v130_v11 = vld [vmem:[#allocation3 + $0x50] sm:$0xff]  ;;  %v161_v12 = vld [vmem:[#allocation6 + $0x48] sm:$0xff]  ;;  %v160_v14 = vld [vmem:[#allocation6 + $0x40] sm:$0xff] }
  0x18   :  { %170 = vmatpush.msra.mxu0 %v165_v4  ;;  %464 = vmatpush.msra.mxu3 %v165_v4  ;;  %v129_v13 = vld [vmem:[#allocation3 + $0x48] sm:$0xff]  ;;  %v128_v15 = vld [vmem:[#allocation3 + $0x40] sm:$0xff]  ;;  %v159_v16 = vld [vmem:[#allocation6 + $0x38] sm:$0xff] }
  0x19   :  { %235 = vmatpush.msra.mxu1 %v133_v5  ;;  %480 = vmatpush.msra.mxu2 %v133_v5  ;;  %v127_v17 = vld [vmem:[#allocation3 + $0x38] sm:$0xff]  ;;  %v158_v18 = vld [vmem:[#allocation6 + $0x30] sm:$0xff]  ;;  %v157_v20 = vld [vmem:[#allocation6 + $0x28] sm:$0xff] }
  0x1a   :  { %171 = vmatpush.msra.mxu0 %v164_v6  ;;  %465 = vmatpush.msra.mxu3 %v164_v6  ;;  %v126_v19 = vld [vmem:[#allocation3 + $0x30] sm:$0xff]  ;;  %v125_v21 = vld [vmem:[#allocation3 + $0x28] sm:$0xff]  ;;  %v156_v22 = vld [vmem:[#allocation6 + $0x20] sm:$0xff] }
  0x1b   :  { %236 = vmatpush.msra.mxu1 %v132_v7  ;;  %481 = vmatpush.msra.mxu2 %v132_v7  ;;  %v124_v23 = vld [vmem:[#allocation3 + $0x20] sm:$0xff]  ;;  %v155_v24 = vld [vmem:[#allocation6 + $0x18] sm:$0xff]  ;;  %v154_v26 = vld [vmem:[#allocation6 + $0x10] sm:$0xff] }
  0x1c   :  { %172 = vmatpush.msra.mxu0 %v163_v8  ;;  %466 = vmatpush.msra.mxu3 %v163_v8  ;;  %v123_v25 = vld [vmem:[#allocation3 + $0x18] sm:$0xff]  ;;  %v122_v27 = vld [vmem:[#allocation3 + $0x10] sm:$0xff]  ;;  %v153_v28 = vld [vmem:[#allocation6 + $0x8] sm:$0xff] }
  0x1d   :  { %237 = vmatpush.msra.mxu1 %v131_v9  ;;  %482 = vmatpush.msra.mxu2 %v131_v9  ;;  %v121_v29 = vld [vmem:[#allocation3 + $0x8] sm:$0xff]  ;;  %v152_v30 = vld [vmem:[#allocation6] sm:$0xff]  ;;  %v146_v33 = vld [vmem:[%s859_s2 + $0x50] sm:$0xff] }
  0x1e   :  { %173 = vmatpush.msra.mxu0 %v162_v10  ;;  %467 = vmatpush.msra.mxu3 %v162_v10  ;;  %v120_v31 = vld [vmem:[#allocation3] sm:$0xff]  ;;  %v114_v35 = vld [vmem:[%s858_s1 + $0x50] sm:$0xff]  ;;  %v137_v36 = vld [vmem:[%s859_s2 + $0x8] sm:$0xff] }
  0x1f   :  { %238 = vmatpush.msra.mxu1 %v130_v11  ;;  %483 = vmatpush.msra.mxu2 %v130_v11  ;;  %v136_v32 = vld [vmem:[%s859_s2] sm:$0xff]  ;;  %v147_v37 = vld [vmem:[%s859_s2 + $0x58] sm:$0xff]  ;;  %v105_v38 = vld [vmem:[%s858_s1 + $0x8] sm:$0xff] }
  0x20   :  { %174 = vmatpush.msra.mxu0 %v161_v12  ;;  %468 = vmatpush.msra.mxu3 %v161_v12  ;;  %v104_v34 = vld [vmem:[%s858_s1] sm:$0xff]  ;;  %v115_v39 = vld [vmem:[%s858_s1 + $0x58] sm:$0xff]  ;;  %v138_v40 = vld [vmem:[%s859_s2 + $0x10] sm:$0xff] }
  0x21   :  { %239 = vmatpush.msra.mxu1 %v129_v13  ;;  %484 = vmatpush.msra.mxu2 %v129_v13  ;;  %v148_v41 = vld [vmem:[%s859_s2 + $0x60] sm:$0xff]  ;;  %v106_v42 = vld [vmem:[%s858_s1 + $0x10] sm:$0xff]  ;;  %v139_v44 = vld [vmem:[%s859_s2 + $0x18] sm:$0xff] }
  0x22   :  { %175 = vmatpush.msra.mxu0 %v160_v14  ;;  %469 = vmatpush.msra.mxu3 %v160_v14  ;;  %v116_v43 = vld [vmem:[%s858_s1 + $0x60] sm:$0xff]  ;;  %v149_v45 = vld [vmem:[%s859_s2 + $0x68] sm:$0xff]  ;;  %v107_v46 = vld [vmem:[%s858_s1 + $0x18] sm:$0xff] }
  0x23   :  { %240 = vmatpush.msra.mxu1 %v128_v15  ;;  %485 = vmatpush.msra.mxu2 %v128_v15  ;;  %v117_v47 = vld [vmem:[%s858_s1 + $0x68] sm:$0xff]  ;;  %v140_v48 = vld [vmem:[%s859_s2 + $0x20] sm:$0xff]  ;;  %v150_v49 = vld [vmem:[%s859_s2 + $0x70] sm:$0xff] }
  0x24   :  { %176 = vmatpush.msra.mxu0 %v159_v16  ;;  %470 = vmatpush.msra.mxu3 %v159_v16  ;;  %v108_v50 = vld [vmem:[%s858_s1 + $0x20] sm:$0xff]  ;;  %v118_v51 = vld [vmem:[%s858_s1 + $0x70] sm:$0xff]  ;;  %v141_v52 = vld [vmem:[%s859_s2 + $0x28] sm:$0xff] }
  0x25   :  { %241 = vmatpush.msra.mxu1 %v127_v17  ;;  %486 = vmatpush.msra.mxu2 %v127_v17  ;;  %v151_v53 = vld [vmem:[%s859_s2 + $0x78] sm:$0xff]  ;;  %v109_v54 = vld [vmem:[%s858_s1 + $0x28] sm:$0xff]  ;;  %v142_v56 = vld [vmem:[%s859_s2 + $0x30] sm:$0xff] }
  0x26   :  { %177 = vmatpush.msra.mxu0 %v158_v18  ;;  %471 = vmatpush.msra.mxu3 %v158_v18  ;;  %v119_v55 = vld [vmem:[%s858_s1 + $0x78] sm:$0xff]  ;;  %v110_v57 = vld [vmem:[%s858_s1 + $0x30] sm:$0xff]  ;;  %v144_v60 = vld [vmem:[%s859_s2 + $0x40] sm:$0xff] }
  0x27   :  { %242 = vmatpush.msra.mxu1 %v126_v19  ;;  %487 = vmatpush.msra.mxu2 %v126_v19  ;;  %v143_v58 = vld [vmem:[%s859_s2 + $0x38] sm:$0xff]  ;;  %v112_v61 = vld [vmem:[%s858_s1 + $0x40] sm:$0xff]  ;;  %v145_v62 = vld [vmem:[%s859_s2 + $0x48] sm:$0xff] }
  0x28   :  { %178 = vmatpush.msra.mxu0 %v157_v20  ;;  %472 = vmatpush.msra.mxu3 %v157_v20  ;;  %v111_v59 = vld [vmem:[%s858_s1 + $0x38] sm:$0xff]  ;;  %v113_v63 = vld [vmem:[%s858_s1 + $0x48] sm:$0xff]  ;;  %v809_v5 = vld [vmem:[%s862_s5] ss:$0 sm:$0xff] }
  0x29   :  { %243 = vmatpush.msra.mxu1 %v125_v21  ;;  %488 = vmatpush.msra.mxu2 %v125_v21 }
  0x2a   :  { %179 = vmatpush.msra.mxu0 %v156_v22  ;;  %473 = vmatpush.msra.mxu3 %v156_v22 }
  0x2b   :  { %244 = vmatpush.msra.mxu1 %v124_v23  ;;  %489 = vmatpush.msra.mxu2 %v124_v23 }
  0x2c   :  { %180 = vmatpush.msra.mxu0 %v155_v24  ;;  %474 = vmatpush.msra.mxu3 %v155_v24 }
  0x2d   :  { %245 = vmatpush.msra.mxu1 %v123_v25  ;;  %490 = vmatpush.msra.mxu2 %v123_v25 }
  0x2e   :  { %181 = vmatpush.msra.mxu0 %v154_v26  ;;  %475 = vmatpush.msra.mxu3 %v154_v26 }
  0x2f   :  { %246 = vmatpush.msra.mxu1 %v122_v27  ;;  %491 = vmatpush.msra.mxu2 %v122_v27 }
  0x30   :  { %182 = vmatpush.msra.mxu0 %v153_v28  ;;  %476 = vmatpush.msra.mxu3 %v153_v28 }
  0x31   :  { %247 = vmatpush.msra.mxu1 %v121_v29  ;;  %492 = vmatpush.msra.mxu2 %v121_v29 }
  0x32   :  { %183 = vmatpush.msra.mxu0 %v152_v30  ;;  %477 = vmatpush.msra.mxu3 %v152_v30 }
  0x33   :  { %248 = vmatpush.msra.mxu1 %v120_v31  ;;  %493 = vmatpush.msra.mxu2 %v120_v31 }
  0x34   :  { %184 = vmatmul.f32.vlgmr.msra.gmra.mxu0 %v136_v32  ;;  %214 = vmatmul.f32.vlgmr.msra.gmra.mxu3 %v146_v33 }
  0x35   :  { %249 = vmatmul.f32.vlgmr.msra.gmra.mxu1 %v104_v34  ;;  %279 = vmatmul.f32.vlgmr.msra.gmra.mxu2 %v114_v35 }
  0x3c   :  { %187 = vmatmul.f32.gmra.mxu0 %v137_v36  ;;  %217 = vmatmul.f32.gmra.mxu3 %v147_v37 }
  0x3d   :  { %252 = vmatmul.f32.gmra.mxu1 %v105_v38  ;;  %282 = vmatmul.f32.gmra.mxu2 %v115_v39 }
  0x44   :  { %190 = vmatmul.f32.gmra.mxu0 %v138_v40  ;;  %220 = vmatmul.f32.gmra.mxu3 %v148_v41 }
  0x45   :  { %255 = vmatmul.f32.gmra.mxu1 %v106_v42  ;;  %285 = vmatmul.f32.gmra.mxu2 %v116_v43 }
  0x4c   :  { %193 = vmatmul.f32.gmra.mxu0 %v139_v44  ;;  %223 = vmatmul.f32.gmra.mxu3 %v149_v45 }
  0x4d   :  { %258 = vmatmul.f32.gmra.mxu1 %v107_v46  ;;  %288 = vmatmul.f32.gmra.mxu2 %v117_v47 }
  0x54   :  { %196 = vmatmul.f32.gmra.mxu0 %v140_v48  ;;  %226 = vmatmul.f32.gmra.mxu3 %v150_v49 }
  0x55   :  { %261 = vmatmul.f32.gmra.mxu1 %v108_v50  ;;  %291 = vmatmul.f32.gmra.mxu2 %v118_v51 }
  0x5c   :  { %199 = vmatmul.f32.gmra.mxu0 %v141_v52  ;;  %229 = vmatmul.f32.gmra.mxu3 %v151_v53  ;;  %v362_v52 = vld [vmem:[#allocation8 + $0x78] sm:$0xff]  ;;  %v361_v53 = vld [vmem:[#allocation8 + $0x70] sm:$0xff] }
  0x5d   :  { %264 = vmatmul.f32.gmra.mxu1 %v109_v54  ;;  %294 = vmatmul.f32.gmra.mxu2 %v119_v55  ;;  %v360_v54 = vld [vmem:[#allocation8 + $0x68] sm:$0xff]  ;;  %v359_v55 = vld [vmem:[#allocation8 + $0x60] sm:$0xff] }
  0x5e   :  { %367 = vmatpush.msrb.mxu3 %v362_v52 }
  0x60   :  { %368 = vmatpush.msrb.mxu3 %v361_v53 }
  0x62   :  { %369 = vmatpush.msrb.mxu3 %v360_v54 }
  0x64   :  { %202 = vmatmul.f32.gmra.mxu0 %v142_v56  ;;  %370 = vmatpush.msrb.mxu3 %v359_v55 }
  0x65   :  { %267 = vmatmul.f32.gmra.mxu1 %v110_v57 }
  0x6c   :  { %205 = vmatmul.f32.gmra.mxu0 %v143_v58 }
  0x6d   :  { %270 = vmatmul.f32.gmra.mxu1 %v111_v59  ;;  %v358_v59 = vld [vmem:[#allocation8 + $0x58] sm:$0xff] }
  0x6e   :  { %371 = vmatpush.msrb.mxu3 %v358_v59 }
  0x74   :  { %208 = vmatmul.f32.gmra.mxu0 %v144_v60 }
  0x75   :  { %273 = vmatmul.f32.gmra.mxu1 %v112_v61 }
  0x7c   :  { %211 = vmatmul.f32.gmra.mxu0 %v145_v62  ;;  %v357_v62 = vld [vmem:[#allocation8 + $0x50] sm:$0xff] }
  0x7d   :  { %276 = vmatmul.f32.gmra.mxu1 %v113_v63  ;;  %372 = vmatpush.msrb.mxu3 %v357_v62 }
  0xb1   :  { %v185_v0 = vpop.f32.mrf.mxu0 }
  0xb2   :  { %v250_v1 = vpop.f32.mrf.mxu1 }
  0xb3   :  { %v251_v2 = vadd.f32 %v250_v1, %v185_v0 }
  0xb5   :  { %v812_v9 = vadd.f32 %v809_v5, %v251_v2  ;;  %v356_v2 = vld [vmem:[#allocation8 + $0x48] sm:$0xff] }
  0xb6   :  { %373 = vmatpush.msrb.mxu3 %v356_v2 }
  0xb7   :  { %v215_v3 = vpop.f32.mrf.mxu3 }
  0xb8   :  { %v280_v4 = vpop.f32.mrf.mxu2 }
  0xb9   :  { %v188_v6 = vpop.f32.mrf.mxu0  ;;  %v281_v39 = vadd.f32 %v280_v4, %v215_v3 }
  0xba   :  { %v253_v7 = vpop.f32.mrf.mxu1 }
  0xbb   :  { %v254_v8 = vadd.f32 %v253_v7, %v188_v6  ;;  %v312_v44 = vadd.f32 %v809_v5, %v281_v39  ;;  %v355_v7 = vld [vmem:[#allocation8 + $0x40] sm:$0xff] }
  0xbc   :  { %374 = vmatpush.msrb.mxu3 %v355_v7 }
  0xbd   :  { %v815_v10 = vadd.f32 %v809_v5, %v254_v8 }
  0xbf   :  { %v218_v11 = vpop.f32.mrf.mxu3  ;;  %v320_v12 = vpack.c.bf16 %v815_v10, %v812_v9  ;;  %v397_v9 = vld [vmem:[#allocation9 + $0x48] sm:$0xff]  ;;  %v396_v10 = vld [vmem:[#allocation9 + $0x40] sm:$0xff] }
  0xc0   :  { %v283_v13 = vpop.f32.mrf.mxu2 }
  0xc1   :  { %v191_v14 = vpop.f32.mrf.mxu0  ;;  %v284_v40 = vadd.f32 %v283_v13, %v218_v11  ;;  %v354_v13 = vld [vmem:[#allocation8 + $0x38] sm:$0xff] }
  0xc2   :  { %v256_v15 = vpop.f32.mrf.mxu1  ;;  %375 = vmatpush.msrb.mxu3 %v354_v13 }
  0xc3   :  { %v819_v16 = vadd.f32 %v256_v15, %v191_v14  ;;  %v313_v45 = vadd.f32 %v809_v5, %v284_v40 }
  0xc5   :  { %v325_v49 = vpack.c.bf16 %v313_v45, %v312_v44  ;;  %v502_v44 = vld [vmem:[%s864_s7] ss:$0 sm:$0xff]  ;;  %s642_s7 = smov [#allocation11]  }
  0xc6   :  { %s448_s30 = sshll.u32 %s642_s7, 4  ;;  %s449_s30 = int_to_ptr.vmem [resolvable:$true] %s448_s30 }
  0xc7   :  { %v221_v17 = vpop.f32.mrf.mxu3 }
  0xc8   :  { %v286_v18 = vpop.f32.mrf.mxu2 }
  0xc9   :  { %v821_v19 = vpop.f32.mrf.mxu0  ;;  %v287_v32 = vadd.f32 %v286_v18, %v221_v17  ;;  %v353_v18 = vld [vmem:[#allocation8 + $0x30] sm:$0xff] }
  0xca   :  { %v823_v20 = vpop.f32.mrf.mxu1  ;;  %376 = vmatpush.msrb.mxu3 %v353_v18 }
  0xcb   :  { %v314_v41 = vadd.f32 %v809_v5, %v287_v32  ;;  %v260_v14 = vadd.f32 %v823_v20, %v821_v19  ;;  %v350_v19 = vld [vmem:[#allocation8 + $0x18] sm:$0xff]  ;;  %v400_v32 = vld [vmem:[#allocation9 + $0x60] sm:$0xff] }
  0xcf   :  { %v224_v21 = vpop.f32.mrf.mxu3 }
  0xd0   :  { %v289_v22 = vpop.f32.mrf.mxu2 }
  0xd1   :  { %v197_v23 = vpop.f32.mrf.mxu0  ;;  %v290_v33 = vadd.f32 %v289_v22, %v224_v21  ;;  %v352_v22 = vld [vmem:[#allocation8 + $0x28] sm:$0xff] }
  0xd2   :  { %v262_v24 = vpop.f32.mrf.mxu1  ;;  %377 = vmatpush.msrb.mxu3 %v352_v22 }
  0xd3   :  { %v315_v42 = vadd.f32 %v809_v5, %v290_v33  ;;  %v263_v8 = vadd.f32 %v262_v24, %v197_v23  ;;  %v305_v23 = vadd.f32 %v809_v5, %v260_v14  ;;  %v399_v33 = vld [vmem:[#allocation9 + $0x58] sm:$0xff] }
  0xd5   :  { %v326_v47 = vpack.c.bf16 %v315_v42, %v314_v41  ;;  %v306_v21 = vadd.f32 %v809_v5, %v263_v8  ;;  %v390_v41 = vld [vmem:[#allocation9 + $0x10] sm:$0xff]  ;;  %v389_v42 = vld [vmem:[#allocation9 + $0x8] sm:$0xff] }
  0xd7   :  { %v227_v25 = vpop.f32.mrf.mxu3 }
  0xd8   :  { %v292_v26 = vpop.f32.mrf.mxu2 }
  0xd9   :  { %v200_v27 = vpop.f32.mrf.mxu0  ;;  %v293_v29 = vadd.f32 %v292_v26, %v227_v25  ;;  %v351_v25 = vld [vmem:[#allocation8 + $0x20] sm:$0xff]  ;;  %v304_v26 = vadd.f32 %v809_v5, %v819_v16  ;;  %v403_v16 = vld [vmem:[#allocation9 + $0x78] sm:$0xff] }
  0xda   :  { %v265_v28 = vpop.f32.mrf.mxu1  ;;  %378 = vmatpush.msrb.mxu3 %v351_v25 }
  0xdb   :  { %v316_v34 = vadd.f32 %v809_v5, %v293_v29  ;;  %v266_v3 = vadd.f32 %v265_v28, %v200_v27  ;;  %v321_v20 = vpack.c.bf16 %v305_v23, %v304_v26  ;;  %v349_v27 = vld [vmem:[#allocation8 + $0x10] sm:$0xff]  ;;  %v348_v28 = vld [vmem:[#allocation8 + $0x8] sm:$0xff]  ;;  %v319_v29 = vld [vmem:[%s857_s0] sm:$0xf] }
  0xdc   :  { %379 = vmatpush.msrb.mxu3 %v350_v19 }
  0xdd   :  { %v307_v15 = vadd.f32 %v809_v5, %v266_v3 }
  0xde   :  { %380 = vmatpush.msrb.mxu3 %v349_v27 }
  0xdf   :  { %v230_v30 = vpop.f32.mrf.mxu3  ;;  %v322_v24 = vpack.c.bf16 %v307_v15, %v306_v21 }
  0xe0   :  { %v295_v31 = vpop.f32.mrf.mxu2  ;;  %381 = vmatpush.msrb.mxu3 %v348_v28 }
  0xe1   :  { %v296_v35 = vadd.f32 %v295_v31, %v230_v30  ;;  %v203_v36 = vpop.f32.mrf.mxu0  ;;  %v402_v30 = vld [vmem:[#allocation9 + $0x70] sm:$0xff]  ;;  %v401_v31 = vld [vmem:[#allocation9 + $0x68] sm:$0xff] }
  0xe2   :  { %v268_v37 = vpop.f32.mrf.mxu1 }
  0xe3   :  { %v317_v38 = vadd.f32 %v809_v5, %v296_v35  ;;  %v269_v63 = vadd.f32 %v268_v37, %v203_v36  ;;  %v394_v35 = vld [vmem:[#allocation9 + $0x30] sm:$0xff]  ;;  %v393_v36 = vld [vmem:[#allocation9 + $0x28] sm:$0xff]  ;;  %v392_v37 = vld [vmem:[#allocation9 + $0x20] sm:$0xff] }
  0xe5   :  { %v327_v43 = vpack.c.bf16 %v317_v38, %v316_v34  ;;  %v308_v11 = vadd.f32 %v809_v5, %v269_v63  ;;  %v398_v34 = vld [vmem:[#allocation9 + $0x50] sm:$0xff]  ;;  %v391_v38 = vld [vmem:[#allocation9 + $0x18] sm:$0xff] }
  0xe7   :  { %328 = vmatpush.bf16.msrb.mxu2 %v327_v43  ;;  %v388_v43 = vld [vmem:[#allocation9] sm:$0xff] }
  0xe9   :  { %v206_v46 = vpop.f32.mrf.mxu0 }
  0xea   :  { %v271_v48 = vpop.f32.mrf.mxu1 }
  0xeb   :  { %329 = vmatpush.bf16.msrb.mxu2 %v326_v47  ;;  %v272_v60 = vadd.f32 %v271_v48, %v206_v46  ;;  %v428_v48 = vlaneseq }
  0xed   :  { %v309_v4 = vadd.f32 %v809_v5, %v272_v60 }
  0xef   :  { %330 = vmatpush.bf16.msrb.mxu2 %v325_v49  ;;  %v323_v17 = vpack.c.bf16 %v309_v4, %v308_v11  ;;  %v429_v49 = vand.u32 127, %v428_v48 }
  0xf1   :  { %v209_v50 = vpop.f32.mrf.mxu0  ;;  %vm430_vm0 = vcmp.lt.s32.totalorder %v429_v49, 3 }
  0xf2   :  { %v274_v51 = vpop.f32.mrf.mxu1 }
  0xf3   :  { %v275_v56 = vadd.f32 %v274_v51, %v209_v50  ;;  %v503_v50 = vld [vmem:[%s866_s9] ss:$0 sm:$0xff]  ;;  %s450_s9 = sshll.u32 %s867_s10, 4  ;;  %s451_s9 = int_to_ptr.hbm [resolvable:$true] %s450_s9 }
  0xf5   :  { %v310_v0 = vadd.f32 %v809_v5, %v275_v56 }
  0xf9   :  { %v212_v57 = vpop.f32.mrf.mxu0 }
  0xfa   :  { %v277_v58 = vpop.f32.mrf.mxu1 }
  0xfb   :  { %v278_v61 = vadd.f32 %v277_v58, %v212_v57 }
  0xfd   :  { %v311_v1 = vadd.f32 %v809_v5, %v278_v61  ;;  %v347_v5 = vld [vmem:[#allocation8] sm:$0xff] }
  0xfe   :  { %382 = vmatpush.msrb.mxu3 %v347_v5 }
  0xff   :  { %v324_v6 = vpack.c.bf16 %v311_v1, %v310_v0 }
 0x101   :  { %331 = vmatpush.bf16.msrb.mxu2 %v324_v6 }
 0x105   :  { %332 = vmatpush.bf16.msrb.mxu2 %v323_v17 }
 0x109   :  { %333 = vmatpush.bf16.msrb.mxu2 %v322_v24 }
 0x10d   :  { %334 = vmatpush.bf16.msrb.mxu2 %v321_v20 }
 0x111   :  { %335 = vmatpush.bf16.msrb.mxu2 %v320_v12  ;;  %v395_v12 = vld [vmem:[#allocation9 + $0x38] sm:$0xff] }
 0x114   :  { %336 = vmatmul.bf16.vlgmr.msrb.gmra.mxu2 %v319_v29 }
 0x115   :  { %408 = vmatpush.msra.mxu2 %v403_v16 }
 0x117   :  { %409 = vmatpush.msra.mxu2 %v402_v30 }
 0x119   :  { %410 = vmatpush.msra.mxu2 %v401_v31 }
 0x11b   :  { %411 = vmatpush.msra.mxu2 %v400_v32 }
 0x11d   :  { %412 = vmatpush.msra.mxu2 %v399_v33 }
 0x11f   :  { %413 = vmatpush.msra.mxu2 %v398_v34 }
 0x121   :  { %414 = vmatpush.msra.mxu2 %v397_v9 }
 0x123   :  { %415 = vmatpush.msra.mxu2 %v396_v10 }
 0x125   :  { %416 = vmatpush.msra.mxu2 %v395_v12 }
 0x127   :  { %417 = vmatpush.msra.mxu2 %v394_v35 }
 0x129   :  { %418 = vmatpush.msra.mxu2 %v393_v36 }
 0x12b   :  { %419 = vmatpush.msra.mxu2 %v392_v37 }
 0x12d   :  { %420 = vmatpush.msra.mxu2 %v391_v38 }
 0x12f   :  { %421 = vmatpush.msra.mxu2 %v390_v41 }
 0x131   :  { %422 = vmatpush.msra.mxu2 %v389_v42 }
 0x133   :  { %423 = vmatpush.msra.mxu2 %v388_v43 }
 0x197   :  { %v337_v39 = vpop.f32.mrf.mxu2 }
 0x198   :  { %383 = vmatmul.f32.vlgmr.msrb.gmra.mxu3 %v337_v39 }
 0x19f   :  { %v339_v40 = vpop.f32.mrf.mxu2 }
 0x21b   :  { %v384_v45 = vpop.f32.mrf.mxu3 }
 0x21c   :  { %v385_v46 = vadd.f32 %v502_v44, %v384_v45 }
 0x21e   :  { %v387_v47 = vmax.f32 %v385_v46, 0.0 }
 0x220   :  { %424 = vmatmul.f32.vlgmr.msra.gmra.mxu2 %v387_v47 }
 0x2a3   :  { %v425_v51 = vpop.f32.mrf.mxu2 }
 0x2a4   :  { %v426_v52 = vadd.f32 %v503_v50, %v425_v51 }
 0x2a6   :  { %v431_v53 = vsel %vm430_vm0, %v426_v52, -1e+30 }
 0x2a7   :  { %432 = vmax.xlane.f32.xlu0 %v431_v53 }
 0x31a   :  { %v433_v54 = vpop.xlane.xlu0 %432 }
 0x31b   :  { %v434_v55 = vsub.f32 %v431_v53, %v433_v54 }
 0x31d   :  { %v435_v56 = vmul.f32 1.442695, %v434_v55 }
 0x31f   :  { %504 = vpow2.f32 %v435_v56 }
 0x325   :  { %v505_v57 = vpop.eup %504 }
 0x326   :  { %437 = vadd.xlane.f32.xlu0 %v505_v57 }
 0x399   :  { %v438_v58 = vpop.xlane.xlu0 %437 }
 0x39a   :  { %506 = vlog2.f32 %v438_v58 }
 0x3a0   :  { %v507_v59 = vpop.eup %506 }
 0x3a1   :  { %v440_v60 = vmul.f32 0.6931472, %v507_v59 }
 0x3a3   :  { %v441_v61 = vsub.f32 %v434_v55, %v440_v60 }
 0x3a5   :  { %442 = vst [vmem:[#allocation11] sm:$0xff] %v441_v61 }
 0x3a6   :  { %453 = dma.vmem_to_hbm [thread:$0]  %s449_s30, 128, %s451_s9, [#allocation5]  }
 0x3a7   :  { %634 = dma.done.wait [#allocation5], 128  }
 0x3a8   :  { %635 = vsyncadd [#allocation5], 4294967168 }
 0x3a9   :  { %458 = vsyncpa [#allocation4], 1 }
 0x3aa   :  { %459 = vsyncpa [#allocation7], 1 }
 0x3ab   :  { %460 = vsyncpa [#allocation10], 1 }
 0x3ac   :  { %461 = vsyncpa [#allocation5], 1 }

// kernel: gin_dc_forward.4
= control target key start
LH: loop header
LB: loop body
LE: loop exit
PB: predicated region body
PF: predicated region fallthrough
CT: control target
= control target key end

     0   :  { %13 = vsyncpa [#allocation3], 0  ;;  %s710_s0 = inlined_call_operand.hbm [shape: f32[128,128], index: 0, kind: input, shape index: {}]   ;;  %s711_s1 = inlined_call_operand.hbm [shape: f32[128,128], index: 1, kind: input, shape index: {}]   ;;  %s712_s2 = inlined_call_operand.hbm [shape: f32[128,128], index: 2, kind: input, shape index: {}]   ;;  %s713_s3 = inlined_call_operand.vmem [shape: f32[1,128], index: 3, kind: input, shape index: {}]   ;;  %s714_s4 = inlined_call_operand.hbm [shape: f32[128,128], index: 4, kind: input, shape index: {}]   ;;  %s715_s5 = inlined_call_operand.hbm [shape: f32[1,128], index: 5, kind: input, shape index: {}]   ;;  %s716_s6 = inlined_call_operand.vmem [shape: f32[128,128], index: 6, kind: output, shape index: {0}]   ;;  %s717_s7 = inlined_call_operand.vmem [shape: f32[128,128], index: 7, kind: output, shape index: {1}]  }
   0x1   :  { %14 = vsyncpa [#allocation5], 0 }
   0x2   :  { %15 = vsyncpa [#allocation8], 0  ;;  %s33_s26 = sshll.u32 %s711_s1, 4  ;;  %s513_s27 = smov [#allocation4]   ;;  %s34_s26 = int_to_ptr.hbm [resolvable:$true] %s33_s26 }
   0x3   :  { %s35_s28 = sshll.u32 %s513_s27, 4  ;;  %s61_s8 = sshll.u32 %s714_s4, 4  ;;  %s36_s28 = int_to_ptr.vmem [resolvable:$true] %s35_s28  ;;  %s62_s8 = int_to_ptr.hbm [resolvable:$true] %s61_s8 }
   0x4   :  { %s514_s9 = smov 128   ;;  %s515_s10 = smov 8  }
   0x5   :  { %41 = dma.hbm_to_vmem [thread:$0]  %s34_s26, 2048, %s36_s28, [#allocation5], %s514_s9, %s514_s9, %s515_s10  }
   0x6   :  { %s516_s11 = smov [#allocation7]   ;;  %s20_s15 = sshll.u32 %s710_s0, 4  ;;  %s21_s15 = int_to_ptr.hbm [resolvable:$true] %s20_s15 }
   0x7   :  { %s63_s12 = sshll.u32 %s516_s11, 4  ;;  %s46_s17 = sshll.u32 %s712_s2, 4  ;;  %s64_s12 = int_to_ptr.vmem [resolvable:$true] %s63_s12  ;;  %s47_s17 = int_to_ptr.hbm [resolvable:$true] %s46_s17 }
   0x8   :  { %69 = dma.hbm_to_vmem [thread:$0]  %s62_s8, 2048, %s64_s12, [#allocation8], %s514_s9, %s514_s9, %s515_s10  }
   0x9   :  { %s517_s18 = smov [#allocation2]   ;;  %s518_s4 = smov [#allocation6]  }
   0xa   :  { %s22_s19 = sshll.u32 %s517_s18, 4  ;;  %s48_s20 = sshll.u32 %s518_s4, 4  ;;  %s23_s19 = int_to_ptr.vmem [resolvable:$true] %s22_s19  ;;  %s49_s20 = int_to_ptr.vmem [resolvable:$true] %s48_s20 }
   0xb   :  { %28 = dma.hbm_to_vmem [thread:$0]  %s21_s15, 2048, %s23_s19, [#allocation3], %s514_s9, %s514_s9, %s515_s10  }
   0xc   :  { %s75_s23 = sshll.u32 %s715_s5, 4  ;;  %s519_s0 = smov [#allocation9]   ;;  %s76_s23 = int_to_ptr.hbm [resolvable:$true] %s75_s23 }
   0xd   :  { %54 = dma.hbm_to_vmem [thread:$0]  %s47_s17, 2048, %s49_s20, [#allocation5], %s514_s9, %s514_s9, %s515_s10  }
   0xe   :  { %s77_s24 = sshll.u32 %s519_s0, 4  ;;  %s78_s24 = int_to_ptr.vmem [resolvable:$true] %s77_s24 }
   0xf   :  { %80 = dma.hbm_to_vmem [thread:$0]  %s76_s23, 16, %s78_s24, [#allocation8]  }
  0x10   :  { %507 = dma.done.wait [#allocation3], 2048  }
  0x11   :  { %508 = vsyncadd [#allocation3], 4294965248 }
  0x12   :  { %509 = dma.done.wait [#allocation5], 4096  }
  0x13   :  { %510 = vsyncadd [#allocation5], 4294963200 }
  0x14   :  { %511 = dma.done.wait [#allocation8], 2064  }
  0x15   :  { %512 = vsyncadd [#allocation8], 4294965232  ;;  %v132_v0 = vld [vmem:[#allocation6 + $0x78] sm:$0xff]  ;;  %v131_v2 = vld [vmem:[#allocation6 + $0x70] sm:$0xff] }
  0x16   :  { %v249_v1 = vld [vmem:[#allocation7 + $0x78] sm:$0xff]  ;;  %346 = vmatpush.msra.mxu2 %v132_v0  ;;  %v248_v3 = vld [vmem:[#allocation7 + $0x70] sm:$0xff]  ;;  %v130_v4 = vld [vmem:[#allocation6 + $0x68] sm:$0xff]  ;;  %137 = vmatpush.msra.mxu0 %v132_v0 }
  0x17   :  { %362 = vmatpush.msra.mxu3 %v249_v1  ;;  %v247_v5 = vld [vmem:[#allocation7 + $0x68] sm:$0xff]  ;;  %254 = vmatpush.msra.mxu1 %v249_v1  ;;  %v129_v6 = vld [vmem:[#allocation6 + $0x60] sm:$0xff]  ;;  %v128_v8 = vld [vmem:[#allocation6 + $0x58] sm:$0xff] }
  0x18   :  { %347 = vmatpush.msra.mxu2 %v131_v2  ;;  %v246_v7 = vld [vmem:[#allocation7 + $0x60] sm:$0xff]  ;;  %138 = vmatpush.msra.mxu0 %v131_v2  ;;  %v245_v9 = vld [vmem:[#allocation7 + $0x58] sm:$0xff]  ;;  %v127_v10 = vld [vmem:[#allocation6 + $0x50] sm:$0xff] }
  0x19   :  { %363 = vmatpush.msra.mxu3 %v248_v3  ;;  %255 = vmatpush.msra.mxu1 %v248_v3  ;;  %v244_v11 = vld [vmem:[#allocation7 + $0x50] sm:$0xff]  ;;  %v126_v12 = vld [vmem:[#allocation6 + $0x48] sm:$0xff]  ;;  %v125_v14 = vld [vmem:[#allocation6 + $0x40] sm:$0xff] }
  0x1a   :  { %348 = vmatpush.msra.mxu2 %v130_v4  ;;  %139 = vmatpush.msra.mxu0 %v130_v4  ;;  %v243_v13 = vld [vmem:[#allocation7 + $0x48] sm:$0xff]  ;;  %v242_v15 = vld [vmem:[#allocation7 + $0x40] sm:$0xff]  ;;  %v124_v16 = vld [vmem:[#allocation6 + $0x38] sm:$0xff] }
  0x1b   :  { %364 = vmatpush.msra.mxu3 %v247_v5  ;;  %256 = vmatpush.msra.mxu1 %v247_v5  ;;  %v241_v17 = vld [vmem:[#allocation7 + $0x38] sm:$0xff]  ;;  %v123_v18 = vld [vmem:[#allocation6 + $0x30] sm:$0xff]  ;;  %v122_v20 = vld [vmem:[#allocation6 + $0x28] sm:$0xff] }
  0x1c   :  { %349 = vmatpush.msra.mxu2 %v129_v6  ;;  %140 = vmatpush.msra.mxu0 %v129_v6  ;;  %v240_v19 = vld [vmem:[#allocation7 + $0x30] sm:$0xff]  ;;  %v239_v21 = vld [vmem:[#allocation7 + $0x28] sm:$0xff]  ;;  %v121_v22 = vld [vmem:[#allocation6 + $0x20] sm:$0xff] }
  0x1d   :  { %365 = vmatpush.msra.mxu3 %v246_v7  ;;  %257 = vmatpush.msra.mxu1 %v246_v7  ;;  %v238_v23 = vld [vmem:[#allocation7 + $0x20] sm:$0xff]  ;;  %v120_v24 = vld [vmem:[#allocation6 + $0x18] sm:$0xff]  ;;  %v119_v26 = vld [vmem:[#allocation6 + $0x10] sm:$0xff] }
  0x1e   :  { %350 = vmatpush.msra.mxu2 %v128_v8  ;;  %141 = vmatpush.msra.mxu0 %v128_v8  ;;  %v237_v25 = vld [vmem:[#allocation7 + $0x18] sm:$0xff]  ;;  %v236_v27 = vld [vmem:[#allocation7 + $0x10] sm:$0xff]  ;;  %v118_v28 = vld [vmem:[#allocation6 + $0x8] sm:$0xff] }
  0x1f   :  { %366 = vmatpush.msra.mxu3 %v245_v9  ;;  %258 = vmatpush.msra.mxu1 %v245_v9  ;;  %v235_v29 = vld [vmem:[#allocation7 + $0x8] sm:$0xff]  ;;  %v117_v30 = vld [vmem:[#allocation6] sm:$0xff]  ;;  %v111_v40 = vld [vmem:[#allocation2 + $0x50] sm:$0xff] }
  0x20   :  { %351 = vmatpush.msra.mxu2 %v127_v10  ;;  %142 = vmatpush.msra.mxu0 %v127_v10  ;;  %v234_v31 = vld [vmem:[#allocation7] sm:$0xff]  ;;  %v110_v36 = vld [vmem:[#allocation2 + $0x48] sm:$0xff]  ;;  %v228_v41 = vld [vmem:[#allocation4 + $0x50] sm:$0xff] }
  0x21   :  { %367 = vmatpush.msra.mxu3 %v244_v11  ;;  %259 = vmatpush.msra.mxu1 %v244_v11  ;;  %v109_v32 = vld [vmem:[#allocation2 + $0x40] sm:$0xff]  ;;  %v227_v37 = vld [vmem:[#allocation4 + $0x48] sm:$0xff]  ;;  %v103_v42 = vld [vmem:[#allocation2 + $0x10] sm:$0xff] }
  0x22   :  { %352 = vmatpush.msra.mxu2 %v126_v12  ;;  %143 = vmatpush.msra.mxu0 %v126_v12  ;;  %v226_v33 = vld [vmem:[#allocation4 + $0x40] sm:$0xff]  ;;  %v102_v38 = vld [vmem:[#allocation2 + $0x8] sm:$0xff]  ;;  %v220_v43 = vld [vmem:[#allocation4 + $0x10] sm:$0xff] }
  0x23   :  { %368 = vmatpush.msra.mxu3 %v243_v13  ;;  %260 = vmatpush.msra.mxu1 %v243_v13  ;;  %v101_v34 = vld [vmem:[#allocation2] sm:$0xff]  ;;  %v219_v39 = vld [vmem:[#allocation4 + $0x8] sm:$0xff]  ;;  %v112_v44 = vld [vmem:[#allocation2 + $0x58] sm:$0xff] }
  0x24   :  { %353 = vmatpush.msra.mxu2 %v125_v14  ;;  %144 = vmatpush.msra.mxu0 %v125_v14  ;;  %v218_v35 = vld [vmem:[#allocation4] sm:$0xff]  ;;  %v229_v45 = vld [vmem:[#allocation4 + $0x58] sm:$0xff]  ;;  %v114_v52 = vld [vmem:[#allocation2 + $0x68] sm:$0xff] }
  0x25   :  { %369 = vmatpush.msra.mxu3 %v242_v15  ;;  %261 = vmatpush.msra.mxu1 %v242_v15  ;;  %v104_v46 = vld [vmem:[#allocation2 + $0x18] sm:$0xff]  ;;  %v113_v48 = vld [vmem:[#allocation2 + $0x60] sm:$0xff]  ;;  %v231_v53 = vld [vmem:[#allocation4 + $0x68] sm:$0xff] }
  0x26   :  { %354 = vmatpush.msra.mxu2 %v124_v16  ;;  %145 = vmatpush.msra.mxu0 %v124_v16  ;;  %v221_v47 = vld [vmem:[#allocation4 + $0x18] sm:$0xff]  ;;  %v230_v49 = vld [vmem:[#allocation4 + $0x60] sm:$0xff]  ;;  %v106_v54 = vld [vmem:[#allocation2 + $0x28] sm:$0xff] }
  0x27   :  { %370 = vmatpush.msra.mxu3 %v241_v17  ;;  %262 = vmatpush.msra.mxu1 %v241_v17  ;;  %v105_v50 = vld [vmem:[#allocation2 + $0x20] sm:$0xff]  ;;  %v223_v55 = vld [vmem:[#allocation4 + $0x28] sm:$0xff]  ;;  %v115_v56 = vld [vmem:[#allocation2 + $0x70] sm:$0xff] }
  0x28   :  { %355 = vmatpush.msra.mxu2 %v123_v18  ;;  %146 = vmatpush.msra.mxu0 %v123_v18  ;;  %v222_v51 = vld [vmem:[#allocation4 + $0x20] sm:$0xff]  ;;  %v232_v57 = vld [vmem:[#allocation4 + $0x70] sm:$0xff]  ;;  %v116_v60 = vld [vmem:[#allocation2 + $0x78] sm:$0xff] }
  0x29   :  { %371 = vmatpush.msra.mxu3 %v240_v19  ;;  %263 = vmatpush.msra.mxu1 %v240_v19  ;;  %v107_v58 = vld [vmem:[#allocation2 + $0x30] sm:$0xff]  ;;  %v233_v61 = vld [vmem:[#allocation4 + $0x78] sm:$0xff]  ;;  %v578_v0 = vld [vmem:[%s713_s3] ss:$0 sm:$0xff] }
  0x2a   :  { %356 = vmatpush.msra.mxu2 %v122_v20  ;;  %147 = vmatpush.msra.mxu0 %v122_v20  ;;  %v224_v59 = vld [vmem:[#allocation4 + $0x30] sm:$0xff]  ;;  %v108_v62 = vld [vmem:[#allocation2 + $0x38] sm:$0xff]  ;;  %v580_v1 = vld [vmem:[#allocation9] ss:$0 sm:$0xff] }
  0x2b   :  { %372 = vmatpush.msra.mxu3 %v239_v21  ;;  %264 = vmatpush.msra.mxu1 %v239_v21  ;;  %v225_v63 = vld [vmem:[#allocation4 + $0x38] sm:$0xff] }
  0x2c   :  { %357 = vmatpush.msra.mxu2 %v121_v22  ;;  %148 = vmatpush.msra.mxu0 %v121_v22 }
  0x2d   :  { %373 = vmatpush.msra.mxu3 %v238_v23  ;;  %265 = vmatpush.msra.mxu1 %v238_v23 }
  0x2e   :  { %358 = vmatpush.msra.mxu2 %v120_v24  ;;  %149 = vmatpush.msra.mxu0 %v120_v24 }
  0x2f   :  { %374 = vmatpush.msra.mxu3 %v237_v25  ;;  %266 = vmatpush.msra.mxu1 %v237_v25 }
  0x30   :  { %359 = vmatpush.msra.mxu2 %v119_v26  ;;  %150 = vmatpush.msra.mxu0 %v119_v26 }
  0x31   :  { %375 = vmatpush.msra.mxu3 %v236_v27  ;;  %267 = vmatpush.msra.mxu1 %v236_v27 }
  0x32   :  { %360 = vmatpush.msra.mxu2 %v118_v28  ;;  %151 = vmatpush.msra.mxu0 %v118_v28 }
  0x33   :  { %376 = vmatpush.msra.mxu3 %v235_v29  ;;  %268 = vmatpush.msra.mxu1 %v235_v29 }
  0x34   :  { %361 = vmatpush.msra.mxu2 %v117_v30  ;;  %152 = vmatpush.msra.mxu0 %v117_v30 }
  0x35   :  { %377 = vmatpush.msra.mxu3 %v234_v31  ;;  %177 = vmatmul.f32.vlgmr.msra.gmra.mxu2 %v109_v32 }
  0x36   :  { %294 = vmatmul.f32.vlgmr.msra.gmra.mxu3 %v226_v33  ;;  %269 = vmatpush.msra.mxu1 %v234_v31 }
  0x37   :  { %153 = vmatmul.f32.vlgmr.msra.gmra.mxu0 %v101_v34  ;;  %270 = vmatmul.f32.vlgmr.msra.gmra.mxu1 %v218_v35 }
  0x3d   :  { %180 = vmatmul.f32.gmra.mxu2 %v110_v36 }
  0x3e   :  { %297 = vmatmul.f32.gmra.mxu3 %v227_v37 }
  0x3f   :  { %156 = vmatmul.f32.gmra.mxu0 %v102_v38  ;;  %273 = vmatmul.f32.gmra.mxu1 %v219_v39 }
  0x45   :  { %183 = vmatmul.f32.gmra.mxu2 %v111_v40 }
  0x46   :  { %300 = vmatmul.f32.gmra.mxu3 %v228_v41 }
  0x47   :  { %159 = vmatmul.f32.gmra.mxu0 %v103_v42  ;;  %276 = vmatmul.f32.gmra.mxu1 %v220_v43 }
  0x4d   :  { %186 = vmatmul.f32.gmra.mxu2 %v112_v44 }
  0x4e   :  { %303 = vmatmul.f32.gmra.mxu3 %v229_v45 }
  0x4f   :  { %162 = vmatmul.f32.gmra.mxu0 %v104_v46  ;;  %279 = vmatmul.f32.gmra.mxu1 %v221_v47 }
  0x55   :  { %189 = vmatmul.f32.gmra.mxu2 %v113_v48 }
  0x56   :  { %306 = vmatmul.f32.gmra.mxu3 %v230_v49 }
  0x57   :  { %165 = vmatmul.f32.gmra.mxu0 %v105_v50  ;;  %282 = vmatmul.f32.gmra.mxu1 %v222_v51 }
  0x5d   :  { %192 = vmatmul.f32.gmra.mxu2 %v114_v52 }
  0x5e   :  { %309 = vmatmul.f32.gmra.mxu3 %v231_v53 }
  0x5f   :  { %168 = vmatmul.f32.gmra.mxu0 %v106_v54  ;;  %285 = vmatmul.f32.gmra.mxu1 %v223_v55 }
  0x65   :  { %195 = vmatmul.f32.gmra.mxu2 %v115_v56 }
  0x66   :  { %312 = vmatmul.f32.gmra.mxu3 %v232_v57 }
  0x67   :  { %171 = vmatmul.f32.gmra.mxu0 %v107_v58  ;;  %288 = vmatmul.f32.gmra.mxu1 %v224_v59 }
  0x6d   :  { %198 = vmatmul.f32.gmra.mxu2 %v116_v60 }
  0x6e   :  { %315 = vmatmul.f32.gmra.mxu3 %v233_v61 }
  0x6f   :  { %174 = vmatmul.f32.gmra.mxu0 %v108_v62  ;;  %291 = vmatmul.f32.gmra.mxu1 %v225_v63 }
  0xb4   :  { %v154_v2 = vpop.f32.mrf.mxu0  ;;  %v271_v3 = vpop.f32.mrf.mxu1 }
  0xb5   :  { %v155_v4 = vadd.f32 %v578_v0, %v154_v2  ;;  %v272_v5 = vadd.f32 %v580_v1, %v271_v3 }
  0xb7   :  { %202 = vst [vmem:[%s716_s6] sm:$0xff] %v155_v4 }
  0xb8   :  { %v178_v6 = vpop.f32.mrf.mxu2  ;;  %319 = vst [vmem:[%s717_s7] sm:$0xff] %v272_v5 }
  0xb9   :  { %v295_v7 = vpop.f32.mrf.mxu3  ;;  %v179_v8 = vadd.f32 %v578_v0, %v178_v6 }
  0xba   :  { %v296_v9 = vadd.f32 %v580_v1, %v295_v7 }
  0xbb   :  { %210 = vst [vmem:[%s716_s6 + $0x40] sm:$0xff] %v179_v8 }
  0xbc   :  { %327 = vst [vmem:[%s717_s7 + $0x40] sm:$0xff] %v296_v9  ;;  %v157_v10 = vpop.f32.mrf.mxu0  ;;  %v274_v11 = vpop.f32.mrf.mxu1 }
  0xbd   :  { %v158_v12 = vadd.f32 %v578_v0, %v157_v10  ;;  %v275_v13 = vadd.f32 %v580_v1, %v274_v11 }
  0xbf   :  { %203 = vst [vmem:[%s716_s6 + $0x8] sm:$0xff] %v158_v12 }
  0xc0   :  { %v181_v14 = vpop.f32.mrf.mxu2  ;;  %320 = vst [vmem:[%s717_s7 + $0x8] sm:$0xff] %v275_v13 }
  0xc1   :  { %v298_v15 = vpop.f32.mrf.mxu3  ;;  %v182_v16 = vadd.f32 %v578_v0, %v181_v14 }
  0xc2   :  { %v299_v17 = vadd.f32 %v580_v1, %v298_v15 }
  0xc3   :  { %211 = vst [vmem:[%s716_s6 + $0x48] sm:$0xff] %v182_v16 }
  0xc4   :  { %328 = vst [vmem:[%s717_s7 + $0x48] sm:$0xff] %v299_v17  ;;  %v160_v18 = vpop.f32.mrf.mxu0  ;;  %v277_v19 = vpop.f32.mrf.mxu1 }
  0xc5   :  { %v161_v20 = vadd.f32 %v578_v0, %v160_v18  ;;  %v278_v21 = vadd.f32 %v580_v1, %v277_v19 }
  0xc7   :  { %204 = vst [vmem:[%s716_s6 + $0x10] sm:$0xff] %v161_v20 }
  0xc8   :  { %v184_v22 = vpop.f32.mrf.mxu2  ;;  %321 = vst [vmem:[%s717_s7 + $0x10] sm:$0xff] %v278_v21 }
  0xc9   :  { %v301_v23 = vpop.f32.mrf.mxu3  ;;  %v185_v24 = vadd.f32 %v578_v0, %v184_v22 }
  0xca   :  { %v302_v25 = vadd.f32 %v580_v1, %v301_v23 }
  0xcb   :  { %212 = vst [vmem:[%s716_s6 + $0x50] sm:$0xff] %v185_v24 }
  0xcc   :  { %329 = vst [vmem:[%s717_s7 + $0x50] sm:$0xff] %v302_v25  ;;  %v163_v26 = vpop.f32.mrf.mxu0  ;;  %v280_v27 = vpop.f32.mrf.mxu1 }
  0xcd   :  { %v164_v28 = vadd.f32 %v578_v0, %v163_v26  ;;  %v281_v29 = vadd.f32 %v580_v1, %v280_v27 }
  0xcf   :  { %205 = vst [vmem:[%s716_s6 + $0x18] sm:$0xff] %v164_v28 }
  0xd0   :  { %v187_v30 = vpop.f32.mrf.mxu2  ;;  %322 = vst [vmem:[%s717_s7 + $0x18] sm:$0xff] %v281_v29 }
  0xd1   :  { %v304_v31 = vpop.f32.mrf.mxu3  ;;  %v188_v32 = vadd.f32 %v578_v0, %v187_v30 }
  0xd2   :  { %v305_v33 = vadd.f32 %v580_v1, %v304_v31 }
  0xd3   :  { %213 = vst [vmem:[%s716_s6 + $0x58] sm:$0xff] %v188_v32 }
  0xd4   :  { %330 = vst [vmem:[%s717_s7 + $0x58] sm:$0xff] %v305_v33  ;;  %v166_v34 = vpop.f32.mrf.mxu0  ;;  %v283_v35 = vpop.f32.mrf.mxu1 }
  0xd5   :  { %v167_v36 = vadd.f32 %v578_v0, %v166_v34  ;;  %v284_v37 = vadd.f32 %v580_v1, %v283_v35 }
  0xd7   :  { %206 = vst [vmem:[%s716_s6 + $0x20] sm:$0xff] %v167_v36 }
  0xd8   :  { %v190_v38 = vpop.f32.mrf.mxu2  ;;  %323 = vst [vmem:[%s717_s7 + $0x20] sm:$0xff] %v284_v37 }
  0xd9   :  { %v307_v39 = vpop.f32.mrf.mxu3  ;;  %v191_v40 = vadd.f32 %v578_v0, %v190_v38 }
  0xda   :  { %v308_v41 = vadd.f32 %v580_v1, %v307_v39 }
  0xdb   :  { %214 = vst [vmem:[%s716_s6 + $0x60] sm:$0xff] %v191_v40 }
  0xdc   :  { %331 = vst [vmem:[%s717_s7 + $0x60] sm:$0xff] %v308_v41  ;;  %v169_v42 = vpop.f32.mrf.mxu0  ;;  %v286_v43 = vpop.f32.mrf.mxu1 }
  0xdd   :  { %v170_v44 = vadd.f32 %v578_v0, %v169_v42  ;;  %v287_v45 = vadd.f32 %v580_v1, %v286_v43 }
  0xdf   :  { %207 = vst [vmem:[%s716_s6 + $0x28] sm:$0xff] %v170_v44 }
  0xe0   :  { %v193_v46 = vpop.f32.mrf.mxu2  ;;  %324 = vst [vmem:[%s717_s7 + $0x28] sm:$0xff] %v287_v45 }
  0xe1   :  { %v310_v47 = vpop.f32.mrf.mxu3  ;;  %v194_v48 = vadd.f32 %v578_v0, %v193_v46 }
  0xe2   :  { %v311_v49 = vadd.f32 %v580_v1, %v310_v47 }
  0xe3   :  { %215 = vst [vmem:[%s716_s6 + $0x68] sm:$0xff] %v194_v48 }
  0xe4   :  { %332 = vst [vmem:[%s717_s7 + $0x68] sm:$0xff] %v311_v49  ;;  %v172_v50 = vpop.f32.mrf.mxu0  ;;  %v289_v51 = vpop.f32.mrf.mxu1 }
  0xe5   :  { %v173_v52 = vadd.f32 %v578_v0, %v172_v50  ;;  %v290_v53 = vadd.f32 %v580_v1, %v289_v51 }
  0xe7   :  { %208 = vst [vmem:[%s716_s6 + $0x30] sm:$0xff] %v173_v52 }
  0xe8   :  { %v196_v54 = vpop.f32.mrf.mxu2  ;;  %325 = vst [vmem:[%s717_s7 + $0x30] sm:$0xff] %v290_v53 }
  0xe9   :  { %v313_v55 = vpop.f32.mrf.mxu3  ;;  %v197_v56 = vadd.f32 %v578_v0, %v196_v54 }
  0xea   :  { %v314_v57 = vadd.f32 %v580_v1, %v313_v55 }
  0xeb   :  { %216 = vst [vmem:[%s716_s6 + $0x70] sm:$0xff] %v197_v56 }
  0xec   :  { %333 = vst [vmem:[%s717_s7 + $0x70] sm:$0xff] %v314_v57  ;;  %v175_v58 = vpop.f32.mrf.mxu0  ;;  %v292_v59 = vpop.f32.mrf.mxu1 }
  0xed   :  { %v176_v60 = vadd.f32 %v578_v0, %v175_v58  ;;  %v293_v61 = vadd.f32 %v580_v1, %v292_v59 }
  0xef   :  { %209 = vst [vmem:[%s716_s6 + $0x38] sm:$0xff] %v176_v60 }
  0xf0   :  { %v199_v62 = vpop.f32.mrf.mxu2  ;;  %326 = vst [vmem:[%s717_s7 + $0x38] sm:$0xff] %v293_v61 }
  0xf1   :  { %v316_v63 = vpop.f32.mrf.mxu3  ;;  %v200_v2 = vadd.f32 %v578_v0, %v199_v62 }
  0xf2   :  { %v317_v3 = vadd.f32 %v580_v1, %v316_v63 }
  0xf3   :  { %217 = vst [vmem:[%s716_s6 + $0x78] sm:$0xff] %v200_v2 }
  0xf4   :  { %334 = vst [vmem:[%s717_s7 + $0x78] sm:$0xff] %v317_v3 }
  0xf5   :  { %343 = vsyncpa [#allocation3], 1 }
  0xf6   :  { %344 = vsyncpa [#allocation5], 1 }
  0xf7   :  { %345 = vsyncpa [#allocation8], 1 }

// kernel: gin_dc_forward.5
= control target key start
LH: loop header
LB: loop body
LE: loop exit
PB: predicated region body
PF: predicated region fallthrough
CT: control target
= control target key end

     0   :  { %18 = vsyncpa [#allocation5], 0  ;;  %s1757_s0 = inlined_call_operand.hbm [shape: bf16[128,128], index: 0, kind: input, shape index: {}]   ;;  %s1758_s1 = inlined_call_operand.hbm [shape: bf16[128,128], index: 1, kind: input, shape index: {}]   ;;  %s1759_s2 = inlined_call_operand.vmem [shape: f32[128,128], index: 2, kind: input, shape index: {}]   ;;  %s1760_s3 = inlined_call_operand.vmem [shape: f32[128,128], index: 3, kind: input, shape index: {}]   ;;  %s1761_s4 = inlined_call_operand.hbm [shape: f32[128,128], index: 4, kind: input, shape index: {}]   ;;  %s1762_s5 = inlined_call_operand.hbm [shape: f32[128,128], index: 5, kind: input, shape index: {}]   ;;  %s1763_s6 = inlined_call_operand.vmem [shape: f32[1,128], index: 6, kind: input, shape index: {}]   ;;  %s1764_s7 = inlined_call_operand.hbm [shape: f32[128,128], index: 7, kind: input, shape index: {}]   ;;  %s1765_s8 = inlined_call_operand.vmem [shape: f32[1,128], index: 8, kind: input, shape index: {}]   ;;  %s1766_s9 = inlined_call_operand.hbm [shape: f32[128,128], index: 9, kind: input, shape index: {}]   ;;  %s1767_s10 = inlined_call_operand.vmem [shape: f32[1,128], index: 10, kind: input, shape index: {}]   ;;  %s1768_s11 = inlined_call_operand.vmem [shape: f32[128,128], index: 11, kind: output, shape index: {0}]   ;;  %s1769_s12 = inlined_call_operand.vmem [shape: f32[128,128], index: 12, kind: output, shape index: {1}]  }
   0x1   :  { %19 = vsyncpa [#allocation7], 0 }
   0x2   :  { %20 = vsyncpa [#allocation10], 0 }
   0x3   :  { %21 = vsyncpa [#allocation13], 0  ;;  %s39_s23 = sshll.u32 %s1758_s1, 4  ;;  %s1344_s24 = smov [#allocation6]   ;;  %s40_s23 = int_to_ptr.hbm [resolvable:$true] %s39_s23 }
   0x4   :  { %s41_s25 = sshll.u32 %s1344_s24, 4  ;;  %s1345_s26 = smov 64   ;;  %s42_s25 = int_to_ptr.vmem [resolvable:$true] %s41_s25 }
   0x5   :  { %s1346_s27 = smov 4   ;;  %s69_s30 = sshll.u32 %s1762_s5, 4  ;;  %s70_s30 = int_to_ptr.hbm [resolvable:$true] %s69_s30 }
   0x6   :  { %47 = dma.hbm_to_vmem [thread:$0]  %s40_s23, 1024, %s42_s25, [#allocation7], %s1345_s26, %s1345_s26, %s1346_s27  }
   0x7   :  { %s1347_s13 = smov [#allocation9]   ;;  %s26_s17 = sshll.u32 %s1757_s0, 4  ;;  %s27_s17 = int_to_ptr.hbm [resolvable:$true] %s26_s17 }
   0x8   :  { %s71_s14 = sshll.u32 %s1347_s13, 4  ;;  %s1348_s1 = smov 128   ;;  %s72_s14 = int_to_ptr.vmem [resolvable:$true] %s71_s14 }
   0x9   :  { %s1349_s18 = smov 8   ;;  %s56_s21 = sshll.u32 %s1761_s4, 4  ;;  %s57_s21 = int_to_ptr.hbm [resolvable:$true] %s56_s21 }
   0xa   :  { %77 = dma.hbm_to_vmem [thread:$0]  %s70_s30, 2048, %s72_s14, [#allocation10], %s1348_s1, %s1348_s1, %s1349_s18  }
   0xb   :  { %s1350_s22 = smov [#allocation4]   ;;  %s1351_s5 = smov [#allocation8]  }
   0xc   :  { %s28_s23 = sshll.u32 %s1350_s22, 4  ;;  %s58_s24 = sshll.u32 %s1351_s5, 4  ;;  %s29_s23 = int_to_ptr.vmem [resolvable:$true] %s28_s23  ;;  %s59_s24 = int_to_ptr.vmem [resolvable:$true] %s58_s24 }
   0xd   :  { %34 = dma.hbm_to_vmem [thread:$0]  %s27_s17, 1024, %s29_s23, [#allocation5], %s1345_s26, %s1345_s26, %s1346_s27  }
   0xe   :  { %s84_s0 = sshll.u32 %s1764_s7, 4  ;;  %s99_s13 = sshll.u32 %s1766_s9, 4  ;;  %s85_s0 = int_to_ptr.hbm [resolvable:$true] %s84_s0  ;;  %s100_s13 = int_to_ptr.hbm [resolvable:$true] %s99_s13 }
   0xf   :  { %64 = dma.hbm_to_vmem [thread:$0]  %s57_s21, 2048, %s59_s24, [#allocation7], %s1348_s1, %s1348_s1, %s1349_s18  }
  0x10   :  { %s1352_s14 = smov [#allocation11]   ;;  %s1353_s15 = smov [#allocation12]  }
  0x11   :  { %s86_s4 = sshll.u32 %s1352_s14, 4  ;;  %s101_s26 = sshll.u32 %s1353_s15, 4  ;;  %s87_s4 = int_to_ptr.vmem [resolvable:$true] %s86_s4  ;;  %s102_s26 = int_to_ptr.vmem [resolvable:$true] %s101_s26 }
  0x12   :  { %92 = dma.hbm_to_vmem [thread:$0]  %s85_s0, 2048, %s87_s4, [#allocation10], %s1348_s1, %s1348_s1, %s1349_s18  }
  0x13   :  { %107 = dma.hbm_to_vmem [thread:$0]  %s100_s13, 2048, %s102_s26, [#allocation13], %s1348_s1, %s1348_s1, %s1349_s18  }
  0x14   :  { %1336 = dma.done.wait [#allocation5], 1024  }
  0x15   :  { %1337 = vsyncadd [#allocation5], 4294966272 }
  0x16   :  { %1338 = dma.done.wait [#allocation7], 3072  }
  0x17   :  { %1339 = vsyncadd [#allocation7], 4294964224 }
  0x18   :  { %1340 = dma.done.wait [#allocation10], 4096  }
  0x19   :  { %1341 = vsyncadd [#allocation10], 4294963200 }
  0x1a   :  { %1342 = dma.done.wait [#allocation13], 2048  }
  0x1b   :  { %1343 = vsyncadd [#allocation13], 4294965248  ;;  %v233_v0 = vld [vmem:[#allocation9 + $0x78] sm:$0xff]  ;;  %v232_v2 = vld [vmem:[#allocation9 + $0x70] sm:$0xff] }
  0x1c   :  { %v217_v1 = vld [vmem:[#allocation8 + $0x78] sm:$0xff]  ;;  %1115 = vmatpush.msra.mxu2 %v233_v0  ;;  %v216_v3 = vld [vmem:[#allocation8 + $0x70] sm:$0xff]  ;;  %v231_v4 = vld [vmem:[#allocation9 + $0x68] sm:$0xff]  ;;  %234 = vmatpush.msra.mxu0 %v233_v0 }
  0x1d   :  { %1131 = vmatpush.msra.mxu3 %v217_v1  ;;  %v215_v5 = vld [vmem:[#allocation8 + $0x68] sm:$0xff]  ;;  %299 = vmatpush.msra.mxu1 %v217_v1  ;;  %v230_v6 = vld [vmem:[#allocation9 + $0x60] sm:$0xff]  ;;  %v229_v8 = vld [vmem:[#allocation9 + $0x58] sm:$0xff] }
  0x1e   :  { %1116 = vmatpush.msra.mxu2 %v232_v2  ;;  %v214_v7 = vld [vmem:[#allocation8 + $0x60] sm:$0xff]  ;;  %235 = vmatpush.msra.mxu0 %v232_v2  ;;  %v213_v9 = vld [vmem:[#allocation8 + $0x58] sm:$0xff]  ;;  %v228_v10 = vld [vmem:[#allocation9 + $0x50] sm:$0xff] }
  0x1f   :  { %1132 = vmatpush.msra.mxu3 %v216_v3  ;;  %300 = vmatpush.msra.mxu1 %v216_v3  ;;  %v212_v11 = vld [vmem:[#allocation8 + $0x50] sm:$0xff]  ;;  %v227_v12 = vld [vmem:[#allocation9 + $0x48] sm:$0xff]  ;;  %v226_v14 = vld [vmem:[#allocation9 + $0x40] sm:$0xff] }
  0x20   :  { %1117 = vmatpush.msra.mxu2 %v231_v4  ;;  %236 = vmatpush.msra.mxu0 %v231_v4  ;;  %v211_v13 = vld [vmem:[#allocation8 + $0x48] sm:$0xff]  ;;  %v210_v15 = vld [vmem:[#allocation8 + $0x40] sm:$0xff]  ;;  %v225_v16 = vld [vmem:[#allocation9 + $0x38] sm:$0xff] }
  0x21   :  { %1133 = vmatpush.msra.mxu3 %v215_v5  ;;  %301 = vmatpush.msra.mxu1 %v215_v5  ;;  %v209_v17 = vld [vmem:[#allocation8 + $0x38] sm:$0xff]  ;;  %v224_v18 = vld [vmem:[#allocation9 + $0x30] sm:$0xff]  ;;  %v223_v20 = vld [vmem:[#allocation9 + $0x28] sm:$0xff] }
  0x22   :  { %1118 = vmatpush.msra.mxu2 %v230_v6  ;;  %237 = vmatpush.msra.mxu0 %v230_v6  ;;  %v208_v19 = vld [vmem:[#allocation8 + $0x30] sm:$0xff]  ;;  %v207_v21 = vld [vmem:[#allocation8 + $0x28] sm:$0xff]  ;;  %v222_v22 = vld [vmem:[#allocation9 + $0x20] sm:$0xff] }
  0x23   :  { %1134 = vmatpush.msra.mxu3 %v214_v7  ;;  %302 = vmatpush.msra.mxu1 %v214_v7  ;;  %v206_v23 = vld [vmem:[#allocation8 + $0x20] sm:$0xff]  ;;  %v221_v24 = vld [vmem:[#allocation9 + $0x18] sm:$0xff]  ;;  %v220_v26 = vld [vmem:[#allocation9 + $0x10] sm:$0xff] }
  0x24   :  { %1119 = vmatpush.msra.mxu2 %v229_v8  ;;  %238 = vmatpush.msra.mxu0 %v229_v8  ;;  %v205_v25 = vld [vmem:[#allocation8 + $0x18] sm:$0xff]  ;;  %v204_v27 = vld [vmem:[#allocation8 + $0x10] sm:$0xff]  ;;  %v219_v28 = vld [vmem:[#allocation9 + $0x8] sm:$0xff] }
  0x25   :  { %1135 = vmatpush.msra.mxu3 %v213_v9  ;;  %303 = vmatpush.msra.mxu1 %v213_v9  ;;  %v203_v29 = vld [vmem:[#allocation8 + $0x8] sm:$0xff]  ;;  %v218_v30 = vld [vmem:[#allocation9] sm:$0xff]  ;;  %v548_v36 = vld [vmem:[#allocation12 + $0x78] sm:$0xff] }
  0x26   :  { %1120 = vmatpush.msra.mxu2 %v228_v10  ;;  %239 = vmatpush.msra.mxu0 %v228_v10  ;;  %v202_v31 = vld [vmem:[#allocation8] sm:$0xff]  ;;  %v547_v37 = vld [vmem:[#allocation12 + $0x70] sm:$0xff]  ;;  %v546_v38 = vld [vmem:[#allocation12 + $0x68] sm:$0xff] }
  0x27   :  { %1136 = vmatpush.msra.mxu3 %v212_v11  ;;  %304 = vmatpush.msra.mxu1 %v212_v11  ;;  %v1440_v32 = vld [vmem:[%s1760_s3 + $0x40] sm:$0xff]  ;;  %v1458_v39 = vld [vmem:[%s1760_s3 + $0x48] sm:$0xff]  ;;  %v544_v44 = vld [vmem:[#allocation12 + $0x58] sm:$0xff] }
  0x28   :  { %1121 = vmatpush.msra.mxu2 %v227_v12  ;;  %240 = vmatpush.msra.mxu0 %v227_v12  ;;  %v178_v33 = vld [vmem:[%s1759_s2 + $0x40] sm:$0xff]  ;;  %v179_v40 = vld [vmem:[%s1759_s2 + $0x48] sm:$0xff]  ;;  %v543_v45 = vld [vmem:[#allocation12 + $0x50] sm:$0xff] }
  0x29   :  { %1137 = vmatpush.msra.mxu3 %v211_v13  ;;  %305 = vmatpush.msra.mxu1 %v211_v13  ;;  %v1448_v34 = vld [vmem:[%s1760_s3] sm:$0xff]  ;;  %v1466_v42 = vld [vmem:[%s1760_s3 + $0x8] sm:$0xff]  ;;  %v1476_v47 = vld [vmem:[%s1760_s3 + $0x50] sm:$0xff] }
  0x2a   :  { %1122 = vmatpush.msra.mxu2 %v226_v14  ;;  %241 = vmatpush.msra.mxu0 %v226_v14  ;;  %v170_v35 = vld [vmem:[%s1759_s2] sm:$0xff]  ;;  %v171_v43 = vld [vmem:[%s1759_s2 + $0x8] sm:$0xff]  ;;  %v180_v48 = vld [vmem:[%s1759_s2 + $0x50] sm:$0xff] }
  0x2b   :  { %1138 = vmatpush.msra.mxu3 %v210_v15  ;;  %306 = vmatpush.msra.mxu1 %v210_v15  ;;  %v545_v41 = vld [vmem:[#allocation12 + $0x60] sm:$0xff]  ;;  %v542_v46 = vld [vmem:[#allocation12 + $0x48] sm:$0xff]  ;;  %v1484_v50 = vld [vmem:[%s1760_s3 + $0x10] sm:$0xff] }
  0x2c   :  { %1123 = vmatpush.msra.mxu2 %v225_v16  ;;  %242 = vmatpush.msra.mxu0 %v225_v16  ;;  %v541_v49 = vld [vmem:[#allocation12 + $0x40] sm:$0xff]  ;;  %v172_v51 = vld [vmem:[%s1759_s2 + $0x10] sm:$0xff]  ;;  %v540_v52 = vld [vmem:[#allocation12 + $0x38] sm:$0xff] }
  0x2d   :  { %1139 = vmatpush.msra.mxu3 %v209_v17  ;;  %307 = vmatpush.msra.mxu1 %v209_v17  ;;  %v539_v53 = vld [vmem:[#allocation12 + $0x30] sm:$0xff]  ;;  %v538_v54 = vld [vmem:[#allocation12 + $0x28] sm:$0xff]  ;;  %v1494_v55 = vld [vmem:[%s1760_s3 + $0x58] sm:$0xff] }
  0x2e   :  { %1124 = vmatpush.msra.mxu2 %v224_v18  ;;  %243 = vmatpush.msra.mxu0 %v224_v18  ;;  %v181_v56 = vld [vmem:[%s1759_s2 + $0x58] sm:$0xff]  ;;  %v537_v57 = vld [vmem:[#allocation12 + $0x20] sm:$0xff]  ;;  %v535_v61 = vld [vmem:[#allocation12 + $0x10] sm:$0xff] }
  0x2f   :  { %1140 = vmatpush.msra.mxu3 %v208_v19  ;;  %308 = vmatpush.msra.mxu1 %v208_v19  ;;  %v189_v58 = vld [vmem:[%s1760_s3 + $0x18] sm:$0xff]  ;;  %v534_v62 = vld [vmem:[#allocation12 + $0x8] sm:$0xff]  ;;  %v1509_v63 = vld [vmem:[%s1760_s3 + $0x60] sm:$0xff] }
  0x30   :  { %1125 = vmatpush.msra.mxu2 %v223_v20  ;;  %244 = vmatpush.msra.mxu0 %v223_v20  ;;  %v173_v59 = vld [vmem:[%s1759_s2 + $0x18] sm:$0xff]  ;;  %v182_v0 = vld [vmem:[%s1759_s2 + $0x60] sm:$0xff]  ;;  %v199_v4 = vld [vmem:[%s1760_s3 + $0x68] sm:$0xff] }
  0x31   :  { %1141 = vmatpush.msra.mxu3 %v207_v21  ;;  %309 = vmatpush.msra.mxu1 %v207_v21  ;;  %v536_v60 = vld [vmem:[#allocation12 + $0x18] sm:$0xff]  ;;  %v533_v1 = vld [vmem:[#allocation12] sm:$0xff]  ;;  %v183_v5 = vld [vmem:[%s1759_s2 + $0x68] sm:$0xff] }
  0x32   :  { %1126 = vmatpush.msra.mxu2 %v222_v22  ;;  %245 = vmatpush.msra.mxu0 %v222_v22  ;;  %v190_v2 = vld [vmem:[%s1760_s3 + $0x20] sm:$0xff]  ;;  %v191_v6 = vld [vmem:[%s1760_s3 + $0x28] sm:$0xff]  ;;  %v200_v8 = vld [vmem:[%s1760_s3 + $0x70] sm:$0xff] }
  0x33   :  { %1142 = vmatpush.msra.mxu3 %v206_v23  ;;  %310 = vmatpush.msra.mxu1 %v206_v23  ;;  %v174_v3 = vld [vmem:[%s1759_s2 + $0x20] sm:$0xff]  ;;  %v175_v7 = vld [vmem:[%s1759_s2 + $0x28] sm:$0xff]  ;;  %v184_v9 = vld [vmem:[%s1759_s2 + $0x70] sm:$0xff] }
  0x34   :  { %1127 = vmatpush.msra.mxu2 %v221_v24  ;;  %246 = vmatpush.msra.mxu0 %v221_v24  ;;  %v192_v10 = vld [vmem:[%s1760_s3 + $0x30] sm:$0xff]  ;;  %v201_v12 = vld [vmem:[%s1760_s3 + $0x78] sm:$0xff] }
  0x35   :  { %1143 = vmatpush.msra.mxu3 %v205_v25  ;;  %311 = vmatpush.msra.mxu1 %v205_v25  ;;  %v176_v11 = vld [vmem:[%s1759_s2 + $0x30] sm:$0xff]  ;;  %v185_v13 = vld [vmem:[%s1759_s2 + $0x78] sm:$0xff] }
  0x36   :  { %1128 = vmatpush.msra.mxu2 %v220_v26  ;;  %247 = vmatpush.msra.mxu0 %v220_v26  ;;  %v193_v14 = vld [vmem:[%s1760_s3 + $0x38] sm:$0xff] }
  0x37   :  { %1144 = vmatpush.msra.mxu3 %v204_v27  ;;  %312 = vmatpush.msra.mxu1 %v204_v27  ;;  %v177_v15 = vld [vmem:[%s1759_s2 + $0x38] sm:$0xff] }
  0x38   :  { %1129 = vmatpush.msra.mxu2 %v219_v28  ;;  %248 = vmatpush.msra.mxu0 %v219_v28 }
  0x39   :  { %1145 = vmatpush.msra.mxu3 %v203_v29  ;;  %313 = vmatpush.msra.mxu1 %v203_v29 }
  0x3a   :  { %1130 = vmatpush.msra.mxu2 %v218_v30  ;;  %249 = vmatpush.msra.mxu0 %v218_v30 }
  0x3b   :  { %1146 = vmatpush.msra.mxu3 %v202_v31  ;;  %274 = vmatmul.f32.vlgmr.msra.gmra.mxu2 %v1440_v32 }
  0x3c   :  { %339 = vmatmul.f32.vlgmr.msra.gmra.mxu3 %v178_v33  ;;  %314 = vmatpush.msra.mxu1 %v202_v31 }
  0x3d   :  { %250 = vmatmul.f32.vlgmr.msra.gmra.mxu0 %v1448_v34  ;;  %315 = vmatmul.f32.vlgmr.msra.gmra.mxu1 %v170_v35 }
  0x3e   :  { %549 = vmatpush.msrb.mxu3 %v548_v36 }
  0x40   :  { %550 = vmatpush.msrb.mxu3 %v547_v37 }
  0x42   :  { %551 = vmatpush.msrb.mxu3 %v546_v38 }
  0x43   :  { %277 = vmatmul.f32.gmra.mxu2 %v1458_v39 }
  0x44   :  { %342 = vmatmul.f32.gmra.mxu3 %v179_v40 }
  0x45   :  { %552 = vmatpush.msrb.mxu3 %v545_v41  ;;  %253 = vmatmul.f32.gmra.mxu0 %v1466_v42 }
  0x46   :  { %318 = vmatmul.f32.gmra.mxu1 %v171_v43 }
  0x47   :  { %553 = vmatpush.msrb.mxu3 %v544_v44 }
  0x49   :  { %554 = vmatpush.msrb.mxu3 %v543_v45 }
  0x4b   :  { %555 = vmatpush.msrb.mxu3 %v542_v46  ;;  %280 = vmatmul.f32.gmra.mxu2 %v1476_v47 }
  0x4c   :  { %345 = vmatmul.f32.gmra.mxu3 %v180_v48 }
  0x4d   :  { %556 = vmatpush.msrb.mxu3 %v541_v49  ;;  %256 = vmatmul.f32.gmra.mxu0 %v1484_v50 }
  0x4e   :  { %321 = vmatmul.f32.gmra.mxu1 %v172_v51 }
  0x4f   :  { %557 = vmatpush.msrb.mxu3 %v540_v52 }
  0x51   :  { %558 = vmatpush.msrb.mxu3 %v539_v53 }
  0x53   :  { %559 = vmatpush.msrb.mxu3 %v538_v54  ;;  %283 = vmatmul.f32.gmra.mxu2 %v1494_v55 }
  0x54   :  { %348 = vmatmul.f32.gmra.mxu3 %v181_v56 }
  0x55   :  { %560 = vmatpush.msrb.mxu3 %v537_v57  ;;  %259 = vmatmul.f32.gmra.mxu0 %v189_v58 }
  0x56   :  { %324 = vmatmul.f32.gmra.mxu1 %v173_v59 }
  0x57   :  { %561 = vmatpush.msrb.mxu3 %v536_v60 }
  0x59   :  { %562 = vmatpush.msrb.mxu3 %v535_v61 }
  0x5b   :  { %563 = vmatpush.msrb.mxu3 %v534_v62  ;;  %286 = vmatmul.f32.gmra.mxu2 %v1509_v63 }
  0x5c   :  { %351 = vmatmul.f32.gmra.mxu3 %v182_v0 }
  0x5d   :  { %564 = vmatpush.msrb.mxu3 %v533_v1  ;;  %262 = vmatmul.f32.gmra.mxu0 %v190_v2 }
  0x5e   :  { %327 = vmatmul.f32.gmra.mxu1 %v174_v3 }
  0x63   :  { %289 = vmatmul.f32.gmra.mxu2 %v199_v4 }
  0x64   :  { %354 = vmatmul.f32.gmra.mxu3 %v183_v5 }
  0x65   :  { %265 = vmatmul.f32.gmra.mxu0 %v191_v6 }
  0x66   :  { %330 = vmatmul.f32.gmra.mxu1 %v175_v7 }
  0x6b   :  { %292 = vmatmul.f32.gmra.mxu2 %v200_v8 }
  0x6c   :  { %357 = vmatmul.f32.gmra.mxu3 %v184_v9 }
  0x6d   :  { %268 = vmatmul.f32.gmra.mxu0 %v192_v10 }
  0x6e   :  { %333 = vmatmul.f32.gmra.mxu1 %v176_v11 }
  0x73   :  { %295 = vmatmul.f32.gmra.mxu2 %v201_v12 }
  0x74   :  { %360 = vmatmul.f32.gmra.mxu3 %v185_v13  ;;  %v1099_v13 = vld [vmem:[#allocation4] sm:$0xff] }
  0x75   :  { %271 = vmatmul.f32.gmra.mxu0 %v193_v14 }
  0x76   :  { %336 = vmatmul.f32.gmra.mxu1 %v177_v15 }
  0x7c   :  { %565 = vmatmul.f32.vlgmr.msrb.gmra.mxu3 %v1448_v34 }
  0x84   :  { %568 = vmatmul.f32.gmra.mxu3 %v1466_v42 }
  0x8c   :  { %571 = vmatmul.f32.gmra.mxu3 %v1484_v50 }
  0x94   :  { %574 = vmatmul.f32.gmra.mxu3 %v189_v58 }
  0x9c   :  { %577 = vmatmul.f32.gmra.mxu3 %v190_v2 }
  0xa4   :  { %580 = vmatmul.f32.gmra.mxu3 %v191_v6 }
  0xac   :  { %583 = vmatmul.f32.gmra.mxu3 %v192_v10 }
  0xb4   :  { %586 = vmatmul.f32.gmra.mxu3 %v193_v14 }
  0xba   :  { %v251_v16 = vpop.f32.mrf.mxu0  ;;  %v316_v17 = vpop.f32.mrf.mxu1 }
  0xbb   :  { %v1561_v18 = vadd.f32 %v316_v17, %v251_v16  ;;  %v1100_v17 = vld [vmem:[#allocation4 + $0x8] sm:$0xff] }
  0xbc   :  { %589 = vmatmul.f32.gmra.mxu3 %v1440_v32 }
  0xbe   :  { %v275_v19 = vpop.f32.mrf.mxu2 }
  0xbf   :  { %v340_v20 = vpop.f32.mrf.mxu3 }
  0xc0   :  { %v341_v21 = vadd.f32 %v340_v20, %v275_v19 }
  0xc2   :  { %v1564_v22 = vpop.f32.mrf.mxu0 }
  0xc3   :  { %v319_v23 = vpop.f32.mrf.mxu1 }
  0xc4   :  { %592 = vmatmul.f32.gmra.mxu3 %v1458_v39  ;;  %v320_v9 = vadd.f32 %v319_v23, %v1564_v22 }
  0xc6   :  { %v278_v24 = vpop.f32.mrf.mxu2  ;;  %v396_v11 = vpack.c.bf16 %v320_v9, %v1561_v18  ;;  %v1101_v18 = vld [vmem:[#allocation4 + $0x10] sm:$0xff] }
  0xc7   :  { %v343_v25 = vpop.f32.mrf.mxu3 }
  0xc8   :  { %v344_v57 = vadd.f32 %v343_v25, %v278_v24  ;;  %v1102_v25 = vld [vmem:[#allocation4 + $0x18] sm:$0xff] }
  0xca   :  { %v257_v28 = vpop.f32.mrf.mxu0 }
  0xcb   :  { %v322_v29 = vpop.f32.mrf.mxu1 }
  0xcc   :  { %595 = vmatmul.f32.gmra.mxu3 %v1476_v47  ;;  %v323_v5 = vadd.f32 %v322_v29, %v257_v28  ;;  %v1103_v28 = vld [vmem:[#allocation4 + $0x20] sm:$0xff] }
  0xce   :  { %v281_v26 = vpop.f32.mrf.mxu2 }
  0xcf   :  { %v346_v27 = vpop.f32.mrf.mxu3 }
  0xd0   :  { %v347_v56 = vadd.f32 %v346_v27, %v281_v26 }
  0xd2   :  { %v260_v32 = vpop.f32.mrf.mxu0 }
  0xd3   :  { %v325_v33 = vpop.f32.mrf.mxu1 }
  0xd4   :  { %598 = vmatmul.f32.gmra.mxu3 %v1494_v55  ;;  %v326_v6 = vadd.f32 %v325_v33, %v260_v32  ;;  %v1104_v33 = vld [vmem:[#allocation4 + $0x28] sm:$0xff] }
  0xd6   :  { %v284_v30 = vpop.f32.mrf.mxu2  ;;  %v397_v10 = vpack.c.bf16 %v326_v6, %v323_v5 }
  0xd7   :  { %v349_v31 = vpop.f32.mrf.mxu3 }
  0xd8   :  { %v350_v53 = vadd.f32 %v349_v31, %v284_v30  ;;  %v853_v30 = vld [vmem:[#allocation11 + $0x78] sm:$0xff]  ;;  %v852_v31 = vld [vmem:[#allocation11 + $0x70] sm:$0xff] }
  0xd9   :  { %858 = vmatpush.msrb.mxu1 %v853_v30 }
  0xda   :  { %v263_v36 = vpop.f32.mrf.mxu0  ;;  %v401_v58 = vpack.c.bf16 %v350_v53, %v347_v56  ;;  %v838_v53 = vld [vmem:[#allocation11] sm:$0xff]  ;;  %v1106_v56 = vld [vmem:[#allocation4 + $0x38] sm:$0xff] }
  0xdb   :  { %v328_v37 = vpop.f32.mrf.mxu1  ;;  %859 = vmatpush.msrb.mxu1 %v852_v31 }
  0xdc   :  { %601 = vmatmul.f32.gmra.mxu3 %v1509_v63  ;;  %v400_v63 = vpack.c.bf16 %v344_v57, %v341_v21  ;;  %v329_v2 = vadd.f32 %v328_v37, %v263_v36  ;;  %v849_v36 = vld [vmem:[#allocation11 + $0x58] sm:$0xff]  ;;  %v848_v37 = vld [vmem:[#allocation11 + $0x50] sm:$0xff]  ;;  %v1107_v57 = vld [vmem:[#allocation6] sm:$0xff] }
  0xde   :  { %v287_v34 = vpop.f32.mrf.mxu2 }
  0xdf   :  { %v352_v35 = vpop.f32.mrf.mxu3 }
  0xe0   :  { %v353_v52 = vadd.f32 %v352_v35, %v287_v34  ;;  %v851_v34 = vld [vmem:[#allocation11 + $0x68] sm:$0xff]  ;;  %v850_v35 = vld [vmem:[#allocation11 + $0x60] sm:$0xff] }
  0xe1   :  { %860 = vmatpush.msrb.mxu1 %v851_v34 }
  0xe2   :  { %v266_v40 = vpop.f32.mrf.mxu0 }
  0xe3   :  { %v331_v41 = vpop.f32.mrf.mxu1  ;;  %861 = vmatpush.msrb.mxu1 %v850_v35 }
  0xe4   :  { %604 = vmatmul.f32.gmra.mxu3 %v199_v4  ;;  %v332_v3 = vadd.f32 %v331_v41, %v266_v40  ;;  %v846_v40 = vld [vmem:[#allocation11 + $0x40] sm:$0xff]  ;;  %v845_v41 = vld [vmem:[#allocation11 + $0x38] sm:$0xff] }
  0xe5   :  { %862 = vmatpush.msrb.mxu1 %v849_v36 }
  0xe6   :  { %v290_v38 = vpop.f32.mrf.mxu2  ;;  %v398_v7 = vpack.c.bf16 %v332_v3, %v329_v2 }
  0xe7   :  { %v355_v39 = vpop.f32.mrf.mxu3  ;;  %863 = vmatpush.msrb.mxu1 %v848_v37 }
  0xe8   :  { %v356_v50 = vadd.f32 %v355_v39, %v290_v38  ;;  %v847_v39 = vld [vmem:[#allocation11 + $0x48] sm:$0xff] }
  0xe9   :  { %864 = vmatpush.msrb.mxu1 %v847_v39  ;;  %v1114_v39 = vld [vmem:[#allocation6 + $0x38] sm:$0xff] }
  0xea   :  { %v269_v48 = vpop.f32.mrf.mxu0  ;;  %v402_v54 = vpack.c.bf16 %v356_v50, %v353_v52  ;;  %v840_v50 = vld [vmem:[#allocation11 + $0x10] sm:$0xff] }
  0xeb   :  { %v334_v49 = vpop.f32.mrf.mxu1  ;;  %865 = vmatpush.msrb.mxu1 %v846_v40 }
  0xec   :  { %607 = vmatmul.f32.gmra.mxu3 %v200_v8  ;;  %v335_v61 = vadd.f32 %v334_v49, %v269_v48  ;;  %v841_v48 = vld [vmem:[#allocation11 + $0x18] sm:$0xff] }
  0xed   :  { %866 = vmatpush.msrb.mxu1 %v845_v41 }
  0xee   :  { %v293_v42 = vpop.f32.mrf.mxu2 }
  0xef   :  { %v358_v43 = vpop.f32.mrf.mxu3 }
  0xf0   :  { %v359_v46 = vadd.f32 %v358_v43, %v293_v42  ;;  %v844_v42 = vld [vmem:[#allocation11 + $0x30] sm:$0xff]  ;;  %v843_v43 = vld [vmem:[#allocation11 + $0x28] sm:$0xff] }
  0xf1   :  { %867 = vmatpush.msrb.mxu1 %v844_v42 }
  0xf2   :  { %v272_v59 = vpop.f32.mrf.mxu0 }
  0xf3   :  { %v337_v60 = vpop.f32.mrf.mxu1  ;;  %868 = vmatpush.msrb.mxu1 %v843_v43 }
  0xf4   :  { %610 = vmatmul.f32.gmra.mxu3 %v201_v12  ;;  %v338_v62 = vadd.f32 %v337_v60, %v272_v59 }
  0xf6   :  { %v296_v44 = vpop.f32.mrf.mxu2  ;;  %v399_v4 = vpack.c.bf16 %v338_v62, %v335_v61  ;;  %v1108_v62 = vld [vmem:[#allocation6 + $0x8] sm:$0xff] }
  0xf7   :  { %v361_v45 = vpop.f32.mrf.mxu3 }
  0xf8   :  { %v362_v47 = vadd.f32 %v361_v45, %v296_v44  ;;  %v1105_v45 = vld [vmem:[#allocation4 + $0x30] sm:$0xff] }
  0xfa   :  { %v403_v51 = vpack.c.bf16 %v362_v47, %v359_v46  ;;  %v842_v46 = vld [vmem:[#allocation11 + $0x20] sm:$0xff] }
  0xfb   :  { %869 = vmatpush.msrb.mxu1 %v842_v46  ;;  %v1621_v46 = vld [vmem:[%s1767_s10] ss:$0 sm:$0xff] }
  0xfc   :  { %452 = vmatpush.bf16.msrb.mxu2 %v403_v51  ;;  %v839_v51 = vld [vmem:[#allocation11 + $0x8] sm:$0xff] }
  0xfd   :  { %870 = vmatpush.msrb.mxu1 %v841_v48 }
  0xff   :  { %v1569_v55 = vpop.f32.mrf.mxu3  ;;  %871 = vmatpush.msrb.mxu1 %v840_v50 }
 0x100   :  { %453 = vmatpush.bf16.msrb.mxu2 %v402_v54 }
 0x101   :  { %872 = vmatpush.msrb.mxu1 %v839_v51 }
 0x103   :  { %873 = vmatpush.msrb.mxu1 %v838_v53 }
 0x104   :  { %454 = vmatpush.bf16.msrb.mxu2 %v401_v58  ;;  %v1601_v58 = vld [vmem:[%s1763_s6] ss:$0 sm:$0xff] }
 0x107   :  { %v1571_v0 = vpop.f32.mrf.mxu3 }
 0x108   :  { %v646_v1 = vpack.c.bf16 %v1571_v0, %v1569_v55  ;;  %455 = vmatpush.bf16.msrb.mxu2 %v400_v63 }
 0x10c   :  { %456 = vmatpush.bf16.msrb.mxu2 %v399_v4  ;;  %v1109_v4 = vld [vmem:[#allocation6 + $0x10] sm:$0xff] }
 0x10f   :  { %v1575_v8 = vpop.f32.mrf.mxu3 }
 0x110   :  { %457 = vmatpush.bf16.msrb.mxu2 %v398_v7 }
 0x114   :  { %458 = vmatpush.bf16.msrb.mxu2 %v397_v10 }
 0x117   :  { %v1579_v12 = vpop.f32.mrf.mxu3 }
 0x118   :  { %v647_v14 = vpack.c.bf16 %v1579_v12, %v1575_v8  ;;  %459 = vmatpush.bf16.msrb.mxu2 %v396_v11  ;;  %v1110_v11 = vld [vmem:[#allocation6 + $0x18] sm:$0xff] }
 0x11b   :  { %460 = vmatmul.bf16.vlgmr.msrb.gmra.mxu2 %v1099_v13 }
 0x11f   :  { %v1583_v15 = vpop.f32.mrf.mxu3 }
 0x127   :  { %v1585_v16 = vpop.f32.mrf.mxu3 }
 0x128   :  { %v648_v19 = vpack.c.bf16 %v1585_v16, %v1583_v15 }
 0x12b   :  { %465 = vmatmul.bf16.gmra.mxu2 %v1100_v17 }
 0x12f   :  { %v584_v20 = vpop.f32.mrf.mxu3 }
 0x137   :  { %v587_v21 = vpop.f32.mrf.mxu3 }
 0x138   :  { %v649_v22 = vpack.c.bf16 %v587_v21, %v584_v20 }
 0x13b   :  { %470 = vmatmul.bf16.gmra.mxu2 %v1101_v18 }
 0x13f   :  { %v590_v23 = vpop.f32.mrf.mxu3 }
 0x147   :  { %v593_v24 = vpop.f32.mrf.mxu3 }
 0x148   :  { %v650_v54 = vpack.c.bf16 %v593_v24, %v590_v23 }
 0x14b   :  { %475 = vmatmul.bf16.gmra.mxu2 %v1102_v25  ;;  %v1112_v25 = vld [vmem:[#allocation6 + $0x28] sm:$0xff] }
 0x14f   :  { %v596_v26 = vpop.f32.mrf.mxu3 }
 0x157   :  { %v599_v27 = vpop.f32.mrf.mxu3 }
 0x158   :  { %v651_v52 = vpack.c.bf16 %v599_v27, %v596_v26 }
 0x15b   :  { %480 = vmatmul.bf16.gmra.mxu2 %v1103_v28 }
 0x15f   :  { %v602_v29 = vpop.f32.mrf.mxu3 }
 0x167   :  { %v605_v32 = vpop.f32.mrf.mxu3 }
 0x168   :  { %v652_v49 = vpack.c.bf16 %v605_v32, %v602_v29  ;;  %v1113_v32 = vld [vmem:[#allocation6 + $0x30] sm:$0xff] }
 0x16b   :  { %485 = vmatmul.bf16.gmra.mxu2 %v1104_v33 }
 0x16f   :  { %v608_v38 = vpop.f32.mrf.mxu3 }
 0x177   :  { %v611_v44 = vpop.f32.mrf.mxu3 }
 0x178   :  { %v653_v47 = vpack.c.bf16 %v611_v44, %v608_v38 }
 0x17a   :  { %702 = vmatpush.bf16.msrb.mxu0 %v653_v47 }
 0x17b   :  { %490 = vmatmul.bf16.gmra.mxu2 %v1105_v45 }
 0x17e   :  { %703 = vmatpush.bf16.msrb.mxu0 %v652_v49 }
 0x182   :  { %704 = vmatpush.bf16.msrb.mxu0 %v651_v52  ;;  %v1628_v52 = vld [vmem:[%s1765_s8] ss:$0 sm:$0xff] }
 0x186   :  { %705 = vmatpush.bf16.msrb.mxu0 %v650_v54 }
 0x18a   :  { %706 = vmatpush.bf16.msrb.mxu0 %v649_v22 }
 0x18b   :  { %495 = vmatmul.bf16.gmra.mxu2 %v1106_v56 }
 0x18e   :  { %707 = vmatpush.bf16.msrb.mxu0 %v648_v19  ;;  %v1111_v19 = vld [vmem:[#allocation6 + $0x20] sm:$0xff] }
 0x192   :  { %708 = vmatpush.bf16.msrb.mxu0 %v647_v14 }
 0x196   :  { %709 = vmatpush.bf16.msrb.mxu0 %v646_v1 }
 0x199   :  { %710 = vmatmul.bf16.vlgmr.msrb.gmra.mxu0 %v1107_v57 }
 0x19e   :  { %v461_v59 = vpop.f32.mrf.mxu2 }
 0x19f   :  { %v806_v60 = vadd.f32 %v1601_v58, %v461_v59 }
 0x1a1   :  { %v822_v61 = vmax.f32 %v806_v60, 0.0 }
 0x1a3   :  { %874 = vmatmul.f32.vlgmr.msrb.gmra.mxu1 %v822_v61 }
 0x1a6   :  { %v463_v63 = vpop.f32.mrf.mxu2 }
 0x1a7   :  { %v807_v2 = vadd.f32 %v1601_v58, %v463_v63 }
 0x1a9   :  { %v823_v3 = vmax.f32 %v807_v2, 0.0  ;;  %715 = vmatmul.bf16.gmra.mxu0 %v1108_v62 }
 0x1ab   :  { %877 = vmatmul.f32.gmra.mxu1 %v823_v3 }
 0x1ae   :  { %v466_v55 = vpop.f32.mrf.mxu2 }
 0x1af   :  { %v808_v0 = vadd.f32 %v1601_v58, %v466_v55 }
 0x1b1   :  { %v824_v1 = vmax.f32 %v808_v0, 0.0 }
 0x1b3   :  { %880 = vmatmul.f32.gmra.mxu1 %v824_v1 }
 0x1b6   :  { %v468_v5 = vpop.f32.mrf.mxu2 }
 0x1b7   :  { %v809_v6 = vadd.f32 %v1601_v58, %v468_v5 }
 0x1b9   :  { %v825_v7 = vmax.f32 %v809_v6, 0.0  ;;  %720 = vmatmul.bf16.gmra.mxu0 %v1109_v4 }
 0x1bb   :  { %883 = vmatmul.f32.gmra.mxu1 %v825_v7 }
 0x1be   :  { %v471_v8 = vpop.f32.mrf.mxu2 }
 0x1bf   :  { %v810_v9 = vadd.f32 %v1601_v58, %v471_v8 }
 0x1c1   :  { %v826_v10 = vmax.f32 %v810_v9, 0.0 }
 0x1c3   :  { %886 = vmatmul.f32.gmra.mxu1 %v826_v10 }
 0x1c6   :  { %v473_v12 = vpop.f32.mrf.mxu2 }
 0x1c7   :  { %v811_v13 = vadd.f32 %v1601_v58, %v473_v12 }
 0x1c9   :  { %v827_v14 = vmax.f32 %v811_v13, 0.0  ;;  %725 = vmatmul.bf16.gmra.mxu0 %v1110_v11 }
 0x1cb   :  { %889 = vmatmul.f32.gmra.mxu1 %v827_v14 }
 0x1ce   :  { %v476_v15 = vpop.f32.mrf.mxu2 }
 0x1cf   :  { %v812_v16 = vadd.f32 %v1601_v58, %v476_v15 }
 0x1d1   :  { %v828_v17 = vmax.f32 %v812_v16, 0.0 }
 0x1d3   :  { %892 = vmatmul.f32.gmra.mxu1 %v828_v17 }
 0x1d6   :  { %v478_v20 = vpop.f32.mrf.mxu2 }
 0x1d7   :  { %v813_v21 = vadd.f32 %v1601_v58, %v478_v20 }
 0x1d9   :  { %v829_v18 = vmax.f32 %v813_v21, 0.0  ;;  %730 = vmatmul.bf16.gmra.mxu0 %v1111_v19 }
 0x1db   :  { %895 = vmatmul.f32.gmra.mxu1 %v829_v18 }
 0x1de   :  { %v481_v22 = vpop.f32.mrf.mxu2 }
 0x1df   :  { %v814_v23 = vadd.f32 %v1601_v58, %v481_v22 }
 0x1e1   :  { %v830_v24 = vmax.f32 %v814_v23, 0.0 }
 0x1e3   :  { %898 = vmatmul.f32.gmra.mxu1 %v830_v24 }
 0x1e6   :  { %v483_v26 = vpop.f32.mrf.mxu2 }
 0x1e7   :  { %v815_v27 = vadd.f32 %v1601_v58, %v483_v26 }
 0x1e9   :  { %v831_v28 = vmax.f32 %v815_v27, 0.0  ;;  %735 = vmatmul.bf16.gmra.mxu0 %v1112_v25 }
 0x1eb   :  { %901 = vmatmul.f32.gmra.mxu1 %v831_v28 }
 0x1ee   :  { %v486_v29 = vpop.f32.mrf.mxu2 }
 0x1ef   :  { %v816_v30 = vadd.f32 %v1601_v58, %v486_v29 }
 0x1f1   :  { %v832_v31 = vmax.f32 %v816_v30, 0.0 }
 0x1f3   :  { %904 = vmatmul.f32.gmra.mxu1 %v832_v31 }
 0x1f6   :  { %v488_v33 = vpop.f32.mrf.mxu2 }
 0x1f7   :  { %v817_v34 = vadd.f32 %v1601_v58, %v488_v33 }
 0x1f9   :  { %v833_v35 = vmax.f32 %v817_v34, 0.0  ;;  %740 = vmatmul.bf16.gmra.mxu0 %v1113_v32 }
 0x1fb   :  { %907 = vmatmul.f32.gmra.mxu1 %v833_v35 }
 0x1fe   :  { %v491_v36 = vpop.f32.mrf.mxu2 }
 0x1ff   :  { %v818_v37 = vadd.f32 %v1601_v58, %v491_v36 }
 0x201   :  { %v834_v38 = vmax.f32 %v818_v37, 0.0 }
 0x203   :  { %910 = vmatmul.f32.gmra.mxu1 %v834_v38 }
 0x206   :  { %v493_v40 = vpop.f32.mrf.mxu2 }
 0x207   :  { %v819_v41 = vadd.f32 %v1601_v58, %v493_v40 }
 0x209   :  { %v835_v42 = vmax.f32 %v819_v41, 0.0  ;;  %745 = vmatmul.bf16.gmra.mxu0 %v1114_v39 }
 0x20b   :  { %913 = vmatmul.f32.gmra.mxu1 %v835_v42 }
 0x20e   :  { %v496_v43 = vpop.f32.mrf.mxu2 }
 0x20f   :  { %v820_v44 = vadd.f32 %v1601_v58, %v496_v43 }
 0x211   :  { %v836_v45 = vmax.f32 %v820_v44, 0.0 }
 0x213   :  { %916 = vmatmul.f32.gmra.mxu1 %v836_v45 }
 0x216   :  { %v498_v47 = vpop.f32.mrf.mxu2  ;;  %v711_v48 = vpop.f32.mrf.mxu0 }
 0x217   :  { %v821_v49 = vadd.f32 %v1601_v58, %v498_v47  ;;  %v975_v50 = vadd.f32 %v1621_v46, %v711_v48 }
 0x219   :  { %v837_v51 = vmax.f32 %v821_v49, 0.0  ;;  %1160 = vtanh.f32 %v975_v50 }
 0x21b   :  { %919 = vmatmul.f32.gmra.mxu1 %v837_v51 }
 0x21e   :  { %v713_v53 = vpop.f32.mrf.mxu0 }
 0x21f   :  { %v1161_v54 = vpop.eup %1160  ;;  %v976_v56 = vadd.f32 %v1621_v46, %v713_v53 }
 0x220   :  { %1007 = vst [vmem:[%s1769_s12] sm:$0xff] %v1161_v54  ;;  %v875_v57 = vpop.f32.mrf.mxu1 }
 0x221   :  { %v876_v58 = vadd.f32 %v1628_v52, %v875_v57  ;;  %1162 = vtanh.f32 %v976_v56 }
 0x223   :  { %v923_v59 = vmax.f32 %v876_v58, 0.0 }
 0x225   :  { %939 = vst [vmem:[%s1768_s11] sm:$0xff] %v923_v59 }
 0x226   :  { %v716_v60 = vpop.f32.mrf.mxu0 }
 0x227   :  { %v1163_v61 = vpop.eup %1162  ;;  %v977_v62 = vadd.f32 %v1621_v46, %v716_v60 }
 0x228   :  { %1008 = vst [vmem:[%s1769_s12 + $0x8] sm:$0xff] %v1163_v61  ;;  %v878_v63 = vpop.f32.mrf.mxu1 }
 0x229   :  { %v879_v2 = vadd.f32 %v1628_v52, %v878_v63  ;;  %1164 = vtanh.f32 %v977_v62 }
 0x22b   :  { %v924_v3 = vmax.f32 %v879_v2, 0.0 }
 0x22d   :  { %940 = vst [vmem:[%s1768_s11 + $0x8] sm:$0xff] %v924_v3 }
 0x22e   :  { %v718_v55 = vpop.f32.mrf.mxu0 }
 0x22f   :  { %v1165_v0 = vpop.eup %1164  ;;  %v978_v1 = vadd.f32 %v1621_v46, %v718_v55 }
 0x230   :  { %1009 = vst [vmem:[%s1769_s12 + $0x10] sm:$0xff] %v1165_v0  ;;  %v881_v4 = vpop.f32.mrf.mxu1 }
 0x231   :  { %v882_v5 = vadd.f32 %v1628_v52, %v881_v4  ;;  %1166 = vtanh.f32 %v978_v1 }
 0x233   :  { %v925_v6 = vmax.f32 %v882_v5, 0.0 }
 0x235   :  { %941 = vst [vmem:[%s1768_s11 + $0x10] sm:$0xff] %v925_v6 }
 0x236   :  { %v721_v7 = vpop.f32.mrf.mxu0 }
 0x237   :  { %v1167_v8 = vpop.eup %1166  ;;  %v979_v9 = vadd.f32 %v1621_v46, %v721_v7 }
 0x238   :  { %1010 = vst [vmem:[%s1769_s12 + $0x18] sm:$0xff] %v1167_v8  ;;  %v884_v10 = vpop.f32.mrf.mxu1 }
 0x239   :  { %v885_v11 = vadd.f32 %v1628_v52, %v884_v10  ;;  %1168 = vtanh.f32 %v979_v9 }
 0x23b   :  { %v926_v12 = vmax.f32 %v885_v11, 0.0 }
 0x23d   :  { %942 = vst [vmem:[%s1768_s11 + $0x18] sm:$0xff] %v926_v12 }
 0x23e   :  { %v723_v13 = vpop.f32.mrf.mxu0 }
 0x23f   :  { %v1169_v14 = vpop.eup %1168  ;;  %v980_v15 = vadd.f32 %v1621_v46, %v723_v13 }
 0x240   :  { %1011 = vst [vmem:[%s1769_s12 + $0x20] sm:$0xff] %v1169_v14  ;;  %v887_v16 = vpop.f32.mrf.mxu1 }
 0x241   :  { %v888_v17 = vadd.f32 %v1628_v52, %v887_v16  ;;  %1170 = vtanh.f32 %v980_v15 }
 0x243   :  { %v927_v19 = vmax.f32 %v888_v17, 0.0 }
 0x245   :  { %943 = vst [vmem:[%s1768_s11 + $0x20] sm:$0xff] %v927_v19 }
 0x246   :  { %v726_v20 = vpop.f32.mrf.mxu0 }
 0x247   :  { %v1171_v21 = vpop.eup %1170  ;;  %v981_v18 = vadd.f32 %v1621_v46, %v726_v20 }
 0x248   :  { %1012 = vst [vmem:[%s1769_s12 + $0x28] sm:$0xff] %v1171_v21  ;;  %v890_v22 = vpop.f32.mrf.mxu1 }
 0x249   :  { %v891_v23 = vadd.f32 %v1628_v52, %v890_v22  ;;  %1172 = vtanh.f32 %v981_v18 }
 0x24b   :  { %v928_v24 = vmax.f32 %v891_v23, 0.0 }
 0x24d   :  { %944 = vst [vmem:[%s1768_s11 + $0x28] sm:$0xff] %v928_v24 }
 0x24e   :  { %v728_v25 = vpop.f32.mrf.mxu0 }
 0x24f   :  { %v1173_v26 = vpop.eup %1172  ;;  %v982_v27 = vadd.f32 %v1621_v46, %v728_v25 }
 0x250   :  { %1013 = vst [vmem:[%s1769_s12 + $0x30] sm:$0xff] %v1173_v26  ;;  %v893_v28 = vpop.f32.mrf.mxu1 }
 0x251   :  { %v894_v29 = vadd.f32 %v1628_v52, %v893_v28  ;;  %1174 = vtanh.f32 %v982_v27 }
 0x253   :  { %v929_v30 = vmax.f32 %v894_v29, 0.0 }
 0x255   :  { %945 = vst [vmem:[%s1768_s11 + $0x30] sm:$0xff] %v929_v30 }
 0x256   :  { %v731_v31 = vpop.f32.mrf.mxu0 }
 0x257   :  { %v1175_v32 = vpop.eup %1174  ;;  %v983_v33 = vadd.f32 %v1621_v46, %v731_v31 }
 0x258   :  { %1014 = vst [vmem:[%s1769_s12 + $0x38] sm:$0xff] %v1175_v32  ;;  %v896_v34 = vpop.f32.mrf.mxu1 }
 0x259   :  { %v897_v35 = vadd.f32 %v1628_v52, %v896_v34  ;;  %1176 = vtanh.f32 %v983_v33 }
 0x25b   :  { %v930_v36 = vmax.f32 %v897_v35, 0.0 }
 0x25d   :  { %946 = vst [vmem:[%s1768_s11 + $0x38] sm:$0xff] %v930_v36 }
 0x25e   :  { %v733_v37 = vpop.f32.mrf.mxu0 }
 0x25f   :  { %v1177_v38 = vpop.eup %1176  ;;  %v984_v39 = vadd.f32 %v1621_v46, %v733_v37 }
 0x260   :  { %1015 = vst [vmem:[%s1769_s12 + $0x40] sm:$0xff] %v1177_v38  ;;  %v899_v40 = vpop.f32.mrf.mxu1 }
 0x261   :  { %v900_v41 = vadd.f32 %v1628_v52, %v899_v40  ;;  %1178 = vtanh.f32 %v984_v39 }
 0x263   :  { %v931_v42 = vmax.f32 %v900_v41, 0.0 }
 0x265   :  { %947 = vst [vmem:[%s1768_s11 + $0x40] sm:$0xff] %v931_v42 }
 0x266   :  { %v736_v43 = vpop.f32.mrf.mxu0 }
 0x267   :  { %v1179_v44 = vpop.eup %1178  ;;  %v985_v45 = vadd.f32 %v1621_v46, %v736_v43 }
 0x268   :  { %1016 = vst [vmem:[%s1769_s12 + $0x48] sm:$0xff] %v1179_v44  ;;  %v902_v47 = vpop.f32.mrf.mxu1 }
 0x269   :  { %v903_v48 = vadd.f32 %v1628_v52, %v902_v47  ;;  %1180 = vtanh.f32 %v985_v45 }
 0x26b   :  { %v932_v49 = vmax.f32 %v903_v48, 0.0 }
 0x26d   :  { %948 = vst [vmem:[%s1768_s11 + $0x48] sm:$0xff] %v932_v49 }
 0x26e   :  { %v738_v50 = vpop.f32.mrf.mxu0 }
 0x26f   :  { %v1181_v51 = vpop.eup %1180  ;;  %v986_v53 = vadd.f32 %v1621_v46, %v738_v50 }
 0x270   :  { %1017 = vst [vmem:[%s1769_s12 + $0x50] sm:$0xff] %v1181_v51  ;;  %v905_v54 = vpop.f32.mrf.mxu1 }
 0x271   :  { %v906_v56 = vadd.f32 %v1628_v52, %v905_v54  ;;  %1182 = vtanh.f32 %v986_v53 }
 0x273   :  { %v933_v57 = vmax.f32 %v906_v56, 0.0 }
 0x275   :  { %949 = vst [vmem:[%s1768_s11 + $0x50] sm:$0xff] %v933_v57 }
 0x276   :  { %v741_v58 = vpop.f32.mrf.mxu0 }
 0x277   :  { %v1183_v59 = vpop.eup %1182  ;;  %v987_v60 = vadd.f32 %v1621_v46, %v741_v58 }
 0x278   :  { %1018 = vst [vmem:[%s1769_s12 + $0x58] sm:$0xff] %v1183_v59  ;;  %v908_v61 = vpop.f32.mrf.mxu1 }
 0x279   :  { %v909_v62 = vadd.f32 %v1628_v52, %v908_v61  ;;  %1184 = vtanh.f32 %v987_v60 }
 0x27b   :  { %v934_v63 = vmax.f32 %v909_v62, 0.0 }
 0x27d   :  { %950 = vst [vmem:[%s1768_s11 + $0x58] sm:$0xff] %v934_v63 }
 0x27e   :  { %v743_v2 = vpop.f32.mrf.mxu0 }
 0x27f   :  { %v1185_v3 = vpop.eup %1184  ;;  %v988_v55 = vadd.f32 %v1621_v46, %v743_v2 }
 0x280   :  { %1019 = vst [vmem:[%s1769_s12 + $0x60] sm:$0xff] %v1185_v3  ;;  %v911_v0 = vpop.f32.mrf.mxu1 }
 0x281   :  { %v912_v1 = vadd.f32 %v1628_v52, %v911_v0  ;;  %1186 = vtanh.f32 %v988_v55 }
 0x283   :  { %v935_v4 = vmax.f32 %v912_v1, 0.0 }
 0x285   :  { %951 = vst [vmem:[%s1768_s11 + $0x60] sm:$0xff] %v935_v4 }
 0x286   :  { %v746_v5 = vpop.f32.mrf.mxu0 }
 0x287   :  { %v1187_v6 = vpop.eup %1186  ;;  %v989_v7 = vadd.f32 %v1621_v46, %v746_v5 }
 0x288   :  { %1020 = vst [vmem:[%s1769_s12 + $0x68] sm:$0xff] %v1187_v6  ;;  %v914_v8 = vpop.f32.mrf.mxu1 }
 0x289   :  { %v915_v9 = vadd.f32 %v1628_v52, %v914_v8  ;;  %1188 = vtanh.f32 %v989_v7 }
 0x28b   :  { %v936_v10 = vmax.f32 %v915_v9, 0.0 }
 0x28d   :  { %952 = vst [vmem:[%s1768_s11 + $0x68] sm:$0xff] %v936_v10 }
 0x28e   :  { %v748_v11 = vpop.f32.mrf.mxu0 }
 0x28f   :  { %v1189_v12 = vpop.eup %1188  ;;  %v990_v13 = vadd.f32 %v1621_v46, %v748_v11 }
 0x290   :  { %1021 = vst [vmem:[%s1769_s12 + $0x70] sm:$0xff] %v1189_v12  ;;  %v917_v14 = vpop.f32.mrf.mxu1 }
 0x291   :  { %v918_v15 = vadd.f32 %v1628_v52, %v917_v14  ;;  %1190 = vtanh.f32 %v990_v13 }
 0x293   :  { %v937_v16 = vmax.f32 %v918_v15, 0.0 }
 0x295   :  { %953 = vst [vmem:[%s1768_s11 + $0x70] sm:$0xff] %v937_v16 }
 0x297   :  { %v1191_v17 = vpop.eup %1190 }
 0x298   :  { %1022 = vst [vmem:[%s1769_s12 + $0x78] sm:$0xff] %v1191_v17  ;;  %v920_v19 = vpop.f32.mrf.mxu1 }
 0x299   :  { %v921_v46 = vadd.f32 %v1628_v52, %v920_v19 }
 0x29b   :  { %v938_v20 = vmax.f32 %v921_v46, 0.0 }
 0x29d   :  { %954 = vst [vmem:[%s1768_s11 + $0x78] sm:$0xff] %v938_v20 }
 0x29e   :  { %1031 = vsyncpa [#allocation5], 1 }
 0x29f   :  { %1032 = vsyncpa [#allocation7], 1 }
 0x2a0   :  { %1033 = vsyncpa [#allocation10], 1 }
 0x2a1   :  { %1034 = vsyncpa [#allocation13], 1 }

</bundles_post_ra>
